<compile_context>
chip_gen: v5e
topology: v5e:2x2
jax: 0.10.0
libtpu: 0.0.40
codegen_flags: <defaults>
</compile_context>

<pallas_src>
import functools

import jax
import jax.numpy as jnp
from jax import lax
from jax.experimental import pallas as pl
from jax.experimental.pallas import tpu as pltpu

EPS = 1e-5


def _layernorm(z, gamma, beta):
    mu = jnp.mean(z, axis=-1, keepdims=True)
    var = jnp.mean((z - mu) ** 2, axis=-1, keepdims=True)
    return (z - mu) * lax.rsqrt(var + EPS) * gamma + beta


def encoder_layer_kernel(x_ref, bias_ref,
                         wqkv_ref, bqkv_ref, woh_ref, bo_ref,
                         w1_ref, b1_ref, w2_ref, b2_ref,
                         g1_ref, be1_ref, g2_ref, be2_ref,
                         o_ref,
                         qkv_ref, attn_ref,
                         *, num_heads, batch_tile, seq_len):
    H, S, BT = num_heads, seq_len, batch_tile
    E = x_ref.shape[-1]
    M = BT * S
    bf16 = jnp.bfloat16

    # ---------- row-wise ops run once on the fused (BT*S, E) slab ----------
    x = x_ref[...].reshape(M, E)                               # (M, E) f32

    # Fused Q/K/V projection: one lane-dense MXU matmul, f32 bias add, then a
    # SINGLE bf16 cast spilled to VMEM scratch (halves the largest live
    # activation; per-head slices are re-loaded on demand below).
    qkv = jnp.dot(x.astype(bf16), wqkv_ref[...],
                  preferred_element_type=jnp.float32) + bqkv_ref[...]
    qkv_ref[...] = qkv.astype(bf16)

    # ---------- attention (scores are inherently per-sequence) ----------
    for bt in range(BT):                                       # static tile
        bias = bias_ref[bt].astype(jnp.float32)                # (S, S)
        acc = jnp.zeros((S, E), jnp.float32)
        for h in range(H):                                     # small-H unroll
            q = qkv_ref[pl.ds(bt * S, S), pl.ds(h * E, E)]
            k = qkv_ref[pl.ds(bt * S, S), pl.ds((H + h) * E, E)]
            v = qkv_ref[pl.ds(bt * S, S), pl.ds((2 * H + h) * E, E)]
            # scores = q @ k^T  (module applies no 1/sqrt(d) scaling)
            s = lax.dot_general(q, k, (((1,), (1,)), ((), ())),
                                preferred_element_type=jnp.float32)
            s = s + bias
            # numerically stable softmax; divide on the EUP (approx recip)
            s = s - jnp.max(s, axis=-1, keepdims=True)
            p = jnp.exp(s)
            p = p * pl.reciprocal(jnp.sum(p, axis=-1, keepdims=True),
                                  approx=True)
            hv = jnp.dot(p.astype(bf16), v,
                         preferred_element_type=jnp.float32)
            # concat-free output projection: cat(heads)@Wo == sum_h h@Wo_h
            acc = acc + jnp.dot(hv.astype(bf16), woh_ref[h],
                                preferred_element_type=jnp.float32)
        attn_ref[pl.ds(bt * S, S), :] = acc

    attn = attn_ref[...] + bo_ref[...]

    # ---------- residual + LayerNorm 1 ----------
    x1 = _layernorm(attn + x, g1_ref[...], be1_ref[...])

    # ---------- FeedForward: relu(x1 @ W1 + b1) @ W2 + b2 ----------
    hdn = jnp.maximum(
        jnp.dot(x1.astype(bf16), w1_ref[...],
                preferred_element_type=jnp.float32) + b1_ref[...], 0.0)
    ff = jnp.dot(hdn.astype(bf16), w2_ref[...],
                 preferred_element_type=jnp.float32) + b2_ref[...]

    # ---------- residual + LayerNorm 2 ----------
    y = _layernorm(ff + x1, g2_ref[...], be2_ref[...])
    o_ref[...] = y.reshape(BT, S, E)


def _nbytes(shape, dtype):
    n = 1
    for d in shape:
        n *= d
    return n * jnp.dtype(dtype).itemsize


def _vmem_capacity_bytes():
    """Physical VMEM of the current generation (v5e/v6e 128 MiB, v7x 64 MiB/TC)."""
    try:
        cap = getattr(pltpu.get_tpu_info(), "vmem_capacity_bytes", None)
        if cap:
            return int(cap)
    except Exception:
        pass
    return 64 << 20   # conservative fallback = v7x per-TensorCore VMEM


def _build_call(B, S, E, H, BT, *, single_buffer_weights):
    def const_spec(shape):
        # Grid-invariant (resident) weights/biases: single-buffer them.
        if single_buffer_weights:
            return pl.BlockSpec(shape, lambda b: (0,) * len(shape),
                                pipeline_mode=pl.Buffered(1))
        return pl.BlockSpec(shape, lambda b: (0,) * len(shape))

    in_specs = [
        pl.BlockSpec((BT, S, E), lambda b: (b, 0, 0)),            # x
        pl.BlockSpec((BT, S, S), lambda b: (b, 0, 0)),            # mask bias bf16
        const_spec((E, 3 * H * E)), const_spec((1, 3 * H * E)),   # w_qkv, b_qkv
        const_spec((H, E, E)), const_spec((1, E)),                # wo_h, bo
        const_spec((E, E)), const_spec((1, E)),                   # w1, b1
        const_spec((E, E)), const_spec((1, E)),                   # w2, b2
        const_spec((1, E)), const_spec((1, E)),                   # gamma1, beta1
        const_spec((1, E)), const_spec((1, E)),                   # gamma2, beta2
    ]

    # Explicit VMEM budget from the actual resident blocks (+ headroom),
    # capped by the physical per-core VMEM of the current generation.
    wbuf = 1 if single_buffer_weights else 2
    weight_bytes = wbuf * (
        _nbytes((E, 3 * H * E), jnp.bfloat16)
        + _nbytes((H, E, E), jnp.bfloat16)
        + 2 * _nbytes((E, E), jnp.bfloat16)
        + _nbytes((1, 3 * H * E), jnp.float32)
        + 7 * _nbytes((1, E), jnp.float32))
    stream_bytes = 2 * (2 * _nbytes((BT, S, E), jnp.float32)
                        + _nbytes((BT, S, S), jnp.bfloat16))
    scratch_bytes = (_nbytes((BT * S, 3 * H * E), jnp.bfloat16)
                     + _nbytes((BT * S, E), jnp.float32))
    need = weight_bytes + stream_bytes + scratch_bytes
    cap = _vmem_capacity_bytes()
    vmem_limit = int(min(need + (16 << 20), cap - (8 << 20)))

    kernel = functools.partial(encoder_layer_kernel,
                               num_heads=H, batch_tile=BT, seq_len=S)

    return pl.pallas_call(
        kernel,
        out_shape=jax.ShapeDtypeStruct((B, S, E), jnp.float32),
        grid_spec=pltpu.PrefetchScalarGridSpec(
            num_scalar_prefetch=0,
            grid=(B // BT,),
            in_specs=in_specs,
            out_specs=pl.BlockSpec((BT, S, E), lambda b: (b, 0, 0)),
            scratch_shapes=[
                pltpu.VMEM((BT * S, 3 * H * E), jnp.bfloat16),  # fused qkv
                pltpu.VMEM((BT * S, E), jnp.float32),           # attn accum
            ],
        ),
        compiler_params=pltpu.CompilerParams(
            dimension_semantics=("parallel",),
            vmem_limit_bytes=vmem_limit),
    )


def encoder_layer(x, mask, params, *, batch_tile=1):
    """x: (B, S, E) f32, mask: (B, S, S) f32 (0/1). Returns (B, S, E) f32."""
    B, S, E = x.shape
    H = params["wo_h"].shape[0]
    BT = batch_tile
    assert B % BT == 0, "batch must be divisible by batch_tile"

    # Additive mask bias computed once in the wrapper, streamed as bf16
    # (halves the (B, S, S) HBM read, the dominant activation stream).
    mask_bias = jnp.where(mask == 0, jnp.float32(-1e9),
                          jnp.float32(0.0)).astype(jnp.bfloat16)

    args = (x, mask_bias,
            params["w_qkv"], params["b_qkv"], params["wo_h"], params["bo"],
            params["w1"], params["b1"], params["w2"], params["b2"],
            params["g1"], params["be1"], params["g2"], params["be2"])

    try:
        return _build_call(B, S, E, H, BT, single_buffer_weights=True)(*args)
    except Exception:
        # Fallback for jax builds without BlockSpec pipeline_mode support:
        # identical kernel, default double-buffered weight blocks.
        return _build_call(B, S, E, H, BT, single_buffer_weights=False)(*args)


def init_params(key, e, h):
    """Torch-style uniform(-1/sqrt(fan_in), 1/sqrt(fan_in)) init.

    Weights are stored as (in, out) = torch W.T; Q/K/V heads are fused into
    w_qkv:(E, 3*H*E); the output projection is stored per-head as (H, E, E).
    Matmul weights are bf16; biases and LayerNorm params stay f32.
    """
    keys = jax.random.split(key, 8)

    def lin(kw, kb, fan_in, fan_out):
        bound = 1.0 / (fan_in ** 0.5)
        w = jax.random.uniform(kw, (fan_in, fan_out), jnp.float32, -bound, bound)
        b = jax.random.uniform(kb, (fan_out,), jnp.float32, -bound, bound)
        return w, b

    head_keys = jax.random.split(keys[0], 6 * h)
    wq, bq, wk, bk, wv, bv = [], [], [], [], [], []
    for i in range(h):
        w, b = lin(head_keys[6 * i + 0], head_keys[6 * i + 1], e, e)
        wq.append(w); bq.append(b)
        w, b = lin(head_keys[6 * i + 2], head_keys[6 * i + 3], e, e)
        wk.append(w); bk.append(b)
        w, b = lin(head_keys[6 * i + 4], head_keys[6 * i + 5], e, e)
        wv.append(w); bv.append(b)

    w_qkv = jnp.concatenate(wq + wk + wv, axis=1)            # (E, 3*H*E)
    b_qkv = jnp.concatenate(bq + bk + bv, axis=0)[None, :]   # (1, 3*H*E)

    wo, bo = lin(keys[1], keys[2], e * h, e)
    wo_h = wo.reshape(h, e, e)                               # per-head blocks of Wo
    w1, b1 = lin(keys[3], keys[4], e, e)
    w2, b2 = lin(keys[5], keys[6], e, e)

    bf = jnp.bfloat16
    return {
        "w_qkv": w_qkv.astype(bf), "b_qkv": b_qkv,
        "wo_h": wo_h.astype(bf), "bo": bo[None, :],
        "w1": w1.astype(bf), "b1": b1[None, :],
        "w2": w2.astype(bf), "b2": b2[None, :],
        "g1": jnp.ones((1, e), jnp.float32), "be1": jnp.zeros((1, e), jnp.float32),
        "g2": jnp.ones((1, e), jnp.float32), "be2": jnp.zeros((1, e), jnp.float32),
    }


def encoder_layer_ref(x, mask, p):
    """Pure-JAX reference mirroring the module (same bf16-matmul / f32-acc policy)."""
    B, S, E = x.shape
    H = p["wo_h"].shape[0]
    bf = jnp.bfloat16
    bias = jnp.where(mask == 0, jnp.float32(-1e9), jnp.float32(0.0))

    qkv = jnp.einsum("bse,ef->bsf", x.astype(bf), p["w_qkv"],
                     preferred_element_type=jnp.float32) + p["b_qkv"]
    attn = jnp.zeros((B, S, E), jnp.float32)
    for h in range(H):
        q = qkv[:, :, h * E:(h + 1) * E]
        k = qkv[:, :, (H + h) * E:(H + h + 1) * E]
        v = qkv[:, :, (2 * H + h) * E:(2 * H + h + 1) * E]
        s = jnp.einsum("bqe,bke->bqk", q.astype(bf), k.astype(bf),
                       preferred_element_type=jnp.float32) + bias
        a = jax.nn.softmax(s, axis=-1)
        hv = jnp.einsum("bqk,bke->bqe", a.astype(bf), v.astype(bf),
                        preferred_element_type=jnp.float32)
        attn = attn + jnp.einsum("bse,eo->bso", hv.astype(bf), p["wo_h"][h],
                                 preferred_element_type=jnp.float32)
    attn = attn + p["bo"]

    x1 = _layernorm(attn + x, p["g1"], p["be1"])
    hdn = jnp.maximum(jnp.einsum("bse,ef->bsf", x1.astype(bf), p["w1"],
                                 preferred_element_type=jnp.float32) + p["b1"], 0.0)
    ff = jnp.einsum("bse,ef->bsf", hdn.astype(bf), p["w2"],
                    preferred_element_type=jnp.float32) + p["b2"]
    return _layernorm(ff + x1, p["g2"], p["be2"])


if __name__ == "__main__":
    B, S, E, H = 2, 8, 32, 2
    key = jax.random.PRNGKey(0)
    kx, kmask, kparam = jax.random.split(key, 3)

    x = jax.random.normal(kx, (B, S, E), jnp.float32)
    mask = (jax.random.uniform(kmask, (B, S, S)) > 0.2).astype(jnp.float32)
    params = init_params(kparam, E, H)

    out = encoder_layer(x, mask, params, batch_tile=1)   # grid of 2 even steps
    out = jax.block_until_ready(out)

    ref = encoder_layer_ref(x, mask, params)
    assert out.shape == (B, S, E)
    max_err = float(jnp.max(jnp.abs(out - ref)))
    assert jnp.allclose(out, ref, atol=2e-2, rtol=2e-2), (
        f"mismatch vs reference, max abs err {max_err}")

    print("KERNEL_OK")
</pallas_src>

<mosaic_0001>
module attributes {stable_mosaic.version = 11 : i64} {
  func.func @encoder_layer_kernel(%arg0: i32, %arg1: memref<1x8x32xf32, #tpu.memory_space<vmem>>, %arg2: memref<1x8x8xbf16, #tpu.memory_space<vmem>>, %arg3: memref<32x192xbf16, #tpu.memory_space<vmem>>, %arg4: memref<1x192xf32, #tpu.memory_space<vmem>>, %arg5: memref<2x32x32xbf16, #tpu.memory_space<vmem>>, %arg6: memref<1x32xf32, #tpu.memory_space<vmem>>, %arg7: memref<32x32xbf16, #tpu.memory_space<vmem>>, %arg8: memref<1x32xf32, #tpu.memory_space<vmem>>, %arg9: memref<32x32xbf16, #tpu.memory_space<vmem>>, %arg10: memref<1x32xf32, #tpu.memory_space<vmem>>, %arg11: memref<1x32xf32, #tpu.memory_space<vmem>>, %arg12: memref<1x32xf32, #tpu.memory_space<vmem>>, %arg13: memref<1x32xf32, #tpu.memory_space<vmem>>, %arg14: memref<1x32xf32, #tpu.memory_space<vmem>>, %arg15: memref<1x8x32xf32, #tpu.memory_space<vmem>>, %arg16: memref<8x192xbf16, #tpu.memory_space<vmem>>, %arg17: memref<8x32xf32, #tpu.memory_space<vmem>>) attributes {dimension_semantics = [#tpu.dimension_semantics<parallel>], iteration_bounds = array<i64: 2>, scalar_prefetch = 0 : i64, scratch_operands = 2 : i64, tpu.core_type = #tpu.core_type<tc>, window_params = [{transform_indices = @transform_0, window_bounds = array<i64: 1, 8, 32>}, {transform_indices = @transform_1, window_bounds = array<i64: 1, 8, 8>}, {pipeline_mode = #tpu.pipeline_mode<synchronous>, transform_indices = @transform_2, window_bounds = array<i64: 32, 192>}, {pipeline_mode = #tpu.pipeline_mode<synchronous>, transform_indices = @transform_3, window_bounds = array<i64: 1, 192>}, {pipeline_mode = #tpu.pipeline_mode<synchronous>, transform_indices = @transform_4, window_bounds = array<i64: 2, 32, 32>}, {pipeline_mode = #tpu.pipeline_mode<synchronous>, transform_indices = @transform_5, window_bounds = array<i64: 1, 32>}, {pipeline_mode = #tpu.pipeline_mode<synchronous>, transform_indices = @transform_6, window_bounds = array<i64: 32, 32>}, {pipeline_mode = #tpu.pipeline_mode<synchronous>, transform_indices = @transform_7, window_bounds = array<i64: 1, 32>}, {pipeline_mode = #tpu.pipeline_mode<synchronous>, transform_indices = @transform_8, window_bounds = array<i64: 32, 32>}, {pipeline_mode = #tpu.pipeline_mode<synchronous>, transform_indices = @transform_9, window_bounds = array<i64: 1, 32>}, {pipeline_mode = #tpu.pipeline_mode<synchronous>, transform_indices = @transform_10, window_bounds = array<i64: 1, 32>}, {pipeline_mode = #tpu.pipeline_mode<synchronous>, transform_indices = @transform_11, window_bounds = array<i64: 1, 32>}, {pipeline_mode = #tpu.pipeline_mode<synchronous>, transform_indices = @transform_12, window_bounds = array<i64: 1, 32>}, {pipeline_mode = #tpu.pipeline_mode<synchronous>, transform_indices = @transform_13, window_bounds = array<i64: 1, 32>}, {transform_indices = @transform_14, window_bounds = array<i64: 1, 8, 32>}]} {
    %c0 = arith.constant 0 : index
    %c0_0 = arith.constant 0 : index
    %c0_1 = arith.constant 0 : index
    %0 = vector.load %arg1[%c0, %c0_0, %c0_1] : memref<1x8x32xf32, #tpu.memory_space<vmem>>, vector<1x8x32xf32>
    %1 = vector.shape_cast %0 : vector<1x8x32xf32> to vector<8x32xf32>
    %2 = arith.truncf %1 : vector<8x32xf32> to vector<8x32xbf16>
    %c0_2 = arith.constant 0 : index
    %c0_3 = arith.constant 0 : index
    %3 = vector.load %arg3[%c0_2, %c0_3] : memref<32x192xbf16, #tpu.memory_space<vmem>>, vector<32x192xbf16>
    %cst = arith.constant dense<0.000000e+00> : vector<8x192xf32>
    %4 = tpu.matmul %2, %3, %cst {dimension_numbers = #tpu.dot_dimension_numbers<[1], [0], [0], [1], [0, 0, 1, 1], [], []>} : vector<8x32xbf16>, vector<32x192xbf16>, vector<8x192xf32> -> vector<8x192xf32>
    %c0_4 = arith.constant 0 : index
    %c0_5 = arith.constant 0 : index
    %5 = vector.load %arg4[%c0_4, %c0_5] : memref<1x192xf32, #tpu.memory_space<vmem>>, vector<1x192xf32>
    %6 = vector.broadcast %5 : vector<1x192xf32> to vector<8x192xf32>
    %7 = arith.addf %4, %6 : vector<8x192xf32>
    %8 = arith.truncf %7 : vector<8x192xf32> to vector<8x192xbf16>
    %c0_6 = arith.constant 0 : index
    %c0_7 = arith.constant 0 : index
    %9 = vector.load %arg16[%c0_6, %c0_7] : memref<8x192xbf16, #tpu.memory_space<vmem>>, vector<8x192xbf16>
    tpu.vector_store %arg16[%c0_6, %c0_7], %8 {strides = array<i32>} : memref<8x192xbf16, #tpu.memory_space<vmem>>, vector<8x192xbf16>,
    %c0_8 = arith.constant 0 : index
    %c0_9 = arith.constant 0 : index
    %c0_10 = arith.constant 0 : index
    %10 = vector.load %arg2[%c0_8, %c0_9, %c0_10] : memref<1x8x8xbf16, #tpu.memory_space<vmem>>, vector<1x8x8xbf16>
    %11 = vector.shape_cast %10 : vector<1x8x8xbf16> to vector<8x8xbf16>
    %12 = arith.extf %11 : vector<8x8xbf16> to vector<8x8xf32>
    %cst_11 = arith.constant 0.000000e+00 : f32
    %13 = vector.broadcast %cst_11 : f32 to vector<8x32xf32>
    %c0_12 = arith.constant 0 : index
    %c0_13 = arith.constant 0 : index
    %14 = vector.load %arg16[%c0_12, %c0_13] : memref<8x192xbf16, #tpu.memory_space<vmem>>, vector<8x32xbf16>
    %c0_14 = arith.constant 0 : index
    %c64 = arith.constant 64 : index
    %15 = vector.load %arg16[%c0_14, %c64] : memref<8x192xbf16, #tpu.memory_space<vmem>>, vector<8x32xbf16>
    %c0_15 = arith.constant 0 : index
    %c128 = arith.constant 128 : index
    %16 = vector.load %arg16[%c0_15, %c128] : memref<8x192xbf16, #tpu.memory_space<vmem>>, vector<8x32xbf16>
    %cst_16 = arith.constant dense<0.000000e+00> : vector<8x8xf32>
    %17 = tpu.matmul %14, %15, %cst_16 {dimension_numbers = #tpu.dot_dimension_numbers<[1], [1], [0], [0], [0, 0, 1, 0], [], []>} : vector<8x32xbf16>, vector<8x32xbf16>, vector<8x8xf32> -> vector<8x8xf32>
    %18 = arith.addf %17, %12 : vector<8x8xf32>
    %cst_17 = arith.constant dense<0xFF800000> : vector<8xf32>
    %19 = vector.multi_reduction <maximumf>, %18, %cst_17 [1] : vector<8x8xf32> to vector<8xf32>
    %20 = vector.shape_cast %19 : vector<8xf32> to vector<8x1xf32>
    %21 = vector.broadcast %20 : vector<8x1xf32> to vector<8x8xf32>
    %22 = arith.subf %18, %21 : vector<8x8xf32>
    %23 = math.exp %22 : vector<8x8xf32>
    %cst_18 = arith.constant dense<0.000000e+00> : vector<8xf32>
    %24 = vector.multi_reduction <add>, %23, %cst_18 [1] : vector<8x8xf32> to vector<8xf32>
    %25 = vector.shape_cast %24 : vector<8xf32> to vector<8x1xf32>
    %26 = tpu.reciprocal %25 {approx = true} : vector<8x1xf32> -> vector<8x1xf32>
    %27 = vector.broadcast %26 : vector<8x1xf32> to vector<8x8xf32>
    %28 = arith.mulf %23, %27 : vector<8x8xf32>
    %29 = arith.truncf %28 : vector<8x8xf32> to vector<8x8xbf16>
    %cst_19 = arith.constant dense<0.000000e+00> : vector<8x32xf32>
    %30 = tpu.matmul %29, %16, %cst_19 {dimension_numbers = #tpu.dot_dimension_numbers<[1], [0], [0], [1], [0, 0, 1, 1], [], []>} : vector<8x8xbf16>, vector<8x32xbf16>, vector<8x32xf32> -> vector<8x32xf32>
    %31 = arith.truncf %30 : vector<8x32xf32> to vector<8x32xbf16>
    %c0_20 = arith.constant 0 : index
    %c0_21 = arith.constant 0 : index
    %c0_22 = arith.constant 0 : index
    %32 = vector.load %arg5[%c0_20, %c0_21, %c0_22] : memref<2x32x32xbf16, #tpu.memory_space<vmem>>, vector<1x32x32xbf16>
    %33 = vector.shape_cast %32 : vector<1x32x32xbf16> to vector<32x32xbf16>
    %cst_23 = arith.constant dense<0.000000e+00> : vector<8x32xf32>
    %34 = tpu.matmul %31, %33, %cst_23 {dimension_numbers = #tpu.dot_dimension_numbers<[1], [0], [0], [1], [0, 0, 1, 1], [], []>} : vector<8x32xbf16>, vector<32x32xbf16>, vector<8x32xf32> -> vector<8x32xf32>
    %35 = arith.addf %13, %34 : vector<8x32xf32>
    %c0_24 = arith.constant 0 : index
    %c32 = arith.constant 32 : index
    %36 = vector.load %arg16[%c0_24, %c32] : memref<8x192xbf16, #tpu.memory_space<vmem>>, vector<8x32xbf16>
    %c0_25 = arith.constant 0 : index
    %c96 = arith.constant 96 : index
    %37 = vector.load %arg16[%c0_25, %c96] : memref<8x192xbf16, #tpu.memory_space<vmem>>, vector<8x32xbf16>
    %c0_26 = arith.constant 0 : index
    %c160 = arith.constant 160 : index
    %38 = vector.load %arg16[%c0_26, %c160] : memref<8x192xbf16, #tpu.memory_space<vmem>>, vector<8x32xbf16>
    %cst_27 = arith.constant dense<0.000000e+00> : vector<8x8xf32>
    %39 = tpu.matmul %36, %37, %cst_27 {dimension_numbers = #tpu.dot_dimension_numbers<[1], [1], [0], [0], [0, 0, 1, 0], [], []>} : vector<8x32xbf16>, vector<8x32xbf16>, vector<8x8xf32> -> vector<8x8xf32>
    %40 = arith.addf %39, %12 : vector<8x8xf32>
    %cst_28 = arith.constant dense<0xFF800000> : vector<8xf32>
    %41 = vector.multi_reduction <maximumf>, %40, %cst_28 [1] : vector<8x8xf32> to vector<8xf32>
    %42 = vector.shape_cast %41 : vector<8xf32> to vector<8x1xf32>
    %43 = vector.broadcast %42 : vector<8x1xf32> to vector<8x8xf32>
    %44 = arith.subf %40, %43 : vector<8x8xf32>
    %45 = math.exp %44 : vector<8x8xf32>
    %cst_29 = arith.constant dense<0.000000e+00> : vector<8xf32>
    %46 = vector.multi_reduction <add>, %45, %cst_29 [1] : vector<8x8xf32> to vector<8xf32>
    %47 = vector.shape_cast %46 : vector<8xf32> to vector<8x1xf32>
    %48 = tpu.reciprocal %47 {approx = true} : vector<8x1xf32> -> vector<8x1xf32>
    %49 = vector.broadcast %48 : vector<8x1xf32> to vector<8x8xf32>
    %50 = arith.mulf %45, %49 : vector<8x8xf32>
    %51 = arith.truncf %50 : vector<8x8xf32> to vector<8x8xbf16>
    %cst_30 = arith.constant dense<0.000000e+00> : vector<8x32xf32>
    %52 = tpu.matmul %51, %38, %cst_30 {dimension_numbers = #tpu.dot_dimension_numbers<[1], [0], [0], [1], [0, 0, 1, 1], [], []>} : vector<8x8xbf16>, vector<8x32xbf16>, vector<8x32xf32> -> vector<8x32xf32>
    %53 = arith.truncf %52 : vector<8x32xf32> to vector<8x32xbf16>
    %c1 = arith.constant 1 : index
    %c0_31 = arith.constant 0 : index
    %c0_32 = arith.constant 0 : index
    %54 = vector.load %arg5[%c1, %c0_31, %c0_32] : memref<2x32x32xbf16, #tpu.memory_space<vmem>>, vector<1x32x32xbf16>
    %55 = vector.shape_cast %54 : vector<1x32x32xbf16> to vector<32x32xbf16>
    %cst_33 = arith.constant dense<0.000000e+00> : vector<8x32xf32>
    %56 = tpu.matmul %53, %55, %cst_33 {dimension_numbers = #tpu.dot_dimension_numbers<[1], [0], [0], [1], [0, 0, 1, 1], [], []>} : vector<8x32xbf16>, vector<32x32xbf16>, vector<8x32xf32> -> vector<8x32xf32>
    %57 = arith.addf %35, %56 : vector<8x32xf32>
    %c0_34 = arith.constant 0 : index
    %c0_35 = arith.constant 0 : index
    %58 = vector.load %arg17[%c0_34, %c0_35] : memref<8x32xf32, #tpu.memory_space<vmem>>, vector<8x32xf32>
    tpu.vector_store %arg17[%c0_34, %c0_35], %57 {strides = array<i32>} : memref<8x32xf32, #tpu.memory_space<vmem>>, vector<8x32xf32>,
    %c0_36 = arith.constant 0 : index
    %c0_37 = arith.constant 0 : index
    %59 = vector.load %arg17[%c0_36, %c0_37] : memref<8x32xf32, #tpu.memory_space<vmem>>, vector<8x32xf32>
    %c0_38 = arith.constant 0 : index
    %c0_39 = arith.constant 0 : index
    %60 = vector.load %arg6[%c0_38, %c0_39] : memref<1x32xf32, #tpu.memory_space<vmem>>, vector<1x32xf32>
    %61 = vector.broadcast %60 : vector<1x32xf32> to vector<8x32xf32>
    %62 = arith.addf %59, %61 : vector<8x32xf32>
    %63 = arith.addf %62, %1 : vector<8x32xf32>
    %c0_40 = arith.constant 0 : index
    %c0_41 = arith.constant 0 : index
    %64 = vector.load %arg11[%c0_40, %c0_41] : memref<1x32xf32, #tpu.memory_space<vmem>>, vector<1x32xf32>
    %c0_42 = arith.constant 0 : index
    %c0_43 = arith.constant 0 : index
    %65 = vector.load %arg12[%c0_42, %c0_43] : memref<1x32xf32, #tpu.memory_space<vmem>>, vector<1x32xf32>
    %cst_44 = arith.constant dense<0.000000e+00> : vector<8xf32>
    %66 = vector.multi_reduction <add>, %63, %cst_44 [1] : vector<8x32xf32> to vector<8xf32>
    %67 = vector.shape_cast %66 : vector<8xf32> to vector<8x1xf32>
    %cst_45 = arith.constant 3.200000e+01 : f32
    %68 = vector.broadcast %cst_45 : f32 to vector<8x1xf32>
    %69 = arith.divf %67, %68 : vector<8x1xf32>
    %70 = vector.broadcast %69 : vector<8x1xf32> to vector<8x32xf32>
    %71 = arith.subf %63, %70 : vector<8x32xf32>
    %72 = arith.mulf %71, %71 : vector<8x32xf32>
    %cst_46 = arith.constant dense<0.000000e+00> : vector<8xf32>
    %73 = vector.multi_reduction <add>, %72, %cst_46 [1] : vector<8x32xf32> to vector<8xf32>
    %74 = vector.shape_cast %73 : vector<8xf32> to vector<8x1xf32>
    %cst_47 = arith.constant 3.200000e+01 : f32
    %75 = vector.broadcast %cst_47 : f32 to vector<8x1xf32>
    %76 = arith.divf %74, %75 : vector<8x1xf32>
    %77 = vector.broadcast %69 : vector<8x1xf32> to vector<8x32xf32>
    %78 = arith.subf %63, %77 : vector<8x32xf32>
    %cst_48 = arith.constant 9.99999974E-6 : f32
    %79 = vector.broadcast %cst_48 : f32 to vector<8x1xf32>
    %80 = arith.addf %76, %79 : vector<8x1xf32>
    %81 = math.rsqrt %80 : vector<8x1xf32>
    %82 = vector.broadcast %81 : vector<8x1xf32> to vector<8x32xf32>
    %83 = arith.mulf %78, %82 : vector<8x32xf32>
    %84 = vector.broadcast %64 : vector<1x32xf32> to vector<8x32xf32>
    %85 = arith.mulf %83, %84 : vector<8x32xf32>
    %86 = vector.broadcast %65 : vector<1x32xf32> to vector<8x32xf32>
    %87 = arith.addf %85, %86 : vector<8x32xf32>
    %88 = arith.truncf %87 : vector<8x32xf32> to vector<8x32xbf16>
    %c0_49 = arith.constant 0 : index
    %c0_50 = arith.constant 0 : index
    %89 = vector.load %arg7[%c0_49, %c0_50] : memref<32x32xbf16, #tpu.memory_space<vmem>>, vector<32x32xbf16>
    %cst_51 = arith.constant dense<0.000000e+00> : vector<8x32xf32>
    %90 = tpu.matmul %88, %89, %cst_51 {dimension_numbers = #tpu.dot_dimension_numbers<[1], [0], [0], [1], [0, 0, 1, 1], [], []>} : vector<8x32xbf16>, vector<32x32xbf16>, vector<8x32xf32> -> vector<8x32xf32>
    %c0_52 = arith.constant 0 : index
    %c0_53 = arith.constant 0 : index
    %91 = vector.load %arg8[%c0_52, %c0_53] : memref<1x32xf32, #tpu.memory_space<vmem>>, vector<1x32xf32>
    %92 = vector.broadcast %91 : vector<1x32xf32> to vector<8x32xf32>
    %93 = arith.addf %90, %92 : vector<8x32xf32>
    %cst_54 = arith.constant 0.000000e+00 : f32
    %94 = vector.broadcast %cst_54 : f32 to vector<8x32xf32>
    %95 = arith.maximumf %93, %94 : vector<8x32xf32>
    %96 = arith.truncf %95 : vector<8x32xf32> to vector<8x32xbf16>
    %c0_55 = arith.constant 0 : index
    %c0_56 = arith.constant 0 : index
    %97 = vector.load %arg9[%c0_55, %c0_56] : memref<32x32xbf16, #tpu.memory_space<vmem>>, vector<32x32xbf16>
    %cst_57 = arith.constant dense<0.000000e+00> : vector<8x32xf32>
    %98 = tpu.matmul %96, %97, %cst_57 {dimension_numbers = #tpu.dot_dimension_numbers<[1], [0], [0], [1], [0, 0, 1, 1], [], []>} : vector<8x32xbf16>, vector<32x32xbf16>, vector<8x32xf32> -> vector<8x32xf32>
    %c0_58 = arith.constant 0 : index
    %c0_59 = arith.constant 0 : index
    %99 = vector.load %arg10[%c0_58, %c0_59] : memref<1x32xf32, #tpu.memory_space<vmem>>, vector<1x32xf32>
    %100 = vector.broadcast %99 : vector<1x32xf32> to vector<8x32xf32>
    %101 = arith.addf %98, %100 : vector<8x32xf32>
    %102 = arith.addf %101, %87 : vector<8x32xf32>
    %c0_60 = arith.constant 0 : index
    %c0_61 = arith.constant 0 : index
    %103 = vector.load %arg13[%c0_60, %c0_61] : memref<1x32xf32, #tpu.memory_space<vmem>>, vector<1x32xf32>
    %c0_62 = arith.constant 0 : index
    %c0_63 = arith.constant 0 : index
    %104 = vector.load %arg14[%c0_62, %c0_63] : memref<1x32xf32, #tpu.memory_space<vmem>>, vector<1x32xf32>
    %cst_64 = arith.constant dense<0.000000e+00> : vector<8xf32>
    %105 = vector.multi_reduction <add>, %102, %cst_64 [1] : vector<8x32xf32> to vector<8xf32>
    %106 = vector.shape_cast %105 : vector<8xf32> to vector<8x1xf32>
    %cst_65 = arith.constant 3.200000e+01 : f32
    %107 = vector.broadcast %cst_65 : f32 to vector<8x1xf32>
    %108 = arith.divf %106, %107 : vector<8x1xf32>
    %109 = vector.broadcast %108 : vector<8x1xf32> to vector<8x32xf32>
    %110 = arith.subf %102, %109 : vector<8x32xf32>
    %111 = arith.mulf %110, %110 : vector<8x32xf32>
    %cst_66 = arith.constant dense<0.000000e+00> : vector<8xf32>
    %112 = vector.multi_reduction <add>, %111, %cst_66 [1] : vector<8x32xf32> to vector<8xf32>
    %113 = vector.shape_cast %112 : vector<8xf32> to vector<8x1xf32>
    %cst_67 = arith.constant 3.200000e+01 : f32
    %114 = vector.broadcast %cst_67 : f32 to vector<8x1xf32>
    %115 = arith.divf %113, %114 : vector<8x1xf32>
    %116 = vector.broadcast %108 : vector<8x1xf32> to vector<8x32xf32>
    %117 = arith.subf %102, %116 : vector<8x32xf32>
    %cst_68 = arith.constant 9.99999974E-6 : f32
    %118 = vector.broadcast %cst_68 : f32 to vector<8x1xf32>
    %119 = arith.addf %115, %118 : vector<8x1xf32>
    %120 = math.rsqrt %119 : vector<8x1xf32>
    %121 = vector.broadcast %120 : vector<8x1xf32> to vector<8x32xf32>
    %122 = arith.mulf %117, %121 : vector<8x32xf32>
    %123 = vector.broadcast %103 : vector<1x32xf32> to vector<8x32xf32>
    %124 = arith.mulf %122, %123 : vector<8x32xf32>
    %125 = vector.broadcast %104 : vector<1x32xf32> to vector<8x32xf32>
    %126 = arith.addf %124, %125 : vector<8x32xf32>
    %127 = vector.shape_cast %126 : vector<8x32xf32> to vector<1x8x32xf32>
    %c0_69 = arith.constant 0 : index
    %c0_70 = arith.constant 0 : index
    %c0_71 = arith.constant 0 : index
    %128 = vector.load %arg15[%c0_69, %c0_70, %c0_71] : memref<1x8x32xf32, #tpu.memory_space<vmem>>, vector<1x8x32xf32>
    tpu.vector_store %arg15[%c0_69, %c0_70, %c0_71], %127 {strides = array<i32>} : memref<1x8x32xf32, #tpu.memory_space<vmem>>, vector<1x8x32xf32>,
    return
  }
  func.func @transform_0(%arg0: i32) -> (i32, i32, i32) {
    %c0_i32 = arith.constant 0 : i32
    %c0_i32_0 = arith.constant 0 : i32
    %c0_i32_1 = arith.constant 0 : i32
    return %arg0, %c0_i32, %c0_i32_0 : i32, i32, i32
  }
  func.func @transform_1(%arg0: i32) -> (i32, i32, i32) {
    %c0_i32 = arith.constant 0 : i32
    %c0_i32_0 = arith.constant 0 : i32
    %c0_i32_1 = arith.constant 0 : i32
    return %arg0, %c0_i32, %c0_i32_0 : i32, i32, i32
  }
  func.func @transform_2(%arg0: i32) -> (i32, i32) {
    %c0_i32 = arith.constant 0 : i32
    %c0_i32_0 = arith.constant 0 : i32
    %c0_i32_1 = arith.constant 0 : i32
    return %c0_i32, %c0_i32_0 : i32, i32
  }
  func.func @transform_3(%arg0: i32) -> (i32, i32) {
    %c0_i32 = arith.constant 0 : i32
    %c0_i32_0 = arith.constant 0 : i32
    %c0_i32_1 = arith.constant 0 : i32
    return %c0_i32, %c0_i32_0 : i32, i32
  }
  func.func @transform_4(%arg0: i32) -> (i32, i32, i32) {
    %c0_i32 = arith.constant 0 : i32
    %c0_i32_0 = arith.constant 0 : i32
    %c0_i32_1 = arith.constant 0 : i32
    %c0_i32_2 = arith.constant 0 : i32
    return %c0_i32, %c0_i32_0, %c0_i32_1 : i32, i32, i32
  }
  func.func @transform_5(%arg0: i32) -> (i32, i32) {
    %c0_i32 = arith.constant 0 : i32
    %c0_i32_0 = arith.constant 0 : i32
    %c0_i32_1 = arith.constant 0 : i32
    return %c0_i32, %c0_i32_0 : i32, i32
  }
  func.func @transform_6(%arg0: i32) -> (i32, i32) {
    %c0_i32 = arith.constant 0 : i32
    %c0_i32_0 = arith.constant 0 : i32
    %c0_i32_1 = arith.constant 0 : i32
    return %c0_i32, %c0_i32_0 : i32, i32
  }
  func.func @transform_7(%arg0: i32) -> (i32, i32) {
    %c0_i32 = arith.constant 0 : i32
    %c0_i32_0 = arith.constant 0 : i32
    %c0_i32_1 = arith.constant 0 : i32
    return %c0_i32, %c0_i32_0 : i32, i32
  }
  func.func @transform_8(%arg0: i32) -> (i32, i32) {
    %c0_i32 = arith.constant 0 : i32
    %c0_i32_0 = arith.constant 0 : i32
    %c0_i32_1 = arith.constant 0 : i32
    return %c0_i32, %c0_i32_0 : i32, i32
  }
  func.func @transform_9(%arg0: i32) -> (i32, i32) {
    %c0_i32 = arith.constant 0 : i32
    %c0_i32_0 = arith.constant 0 : i32
    %c0_i32_1 = arith.constant 0 : i32
    return %c0_i32, %c0_i32_0 : i32, i32
  }
  func.func @transform_10(%arg0: i32) -> (i32, i32) {
    %c0_i32 = arith.constant 0 : i32
    %c0_i32_0 = arith.constant 0 : i32
    %c0_i32_1 = arith.constant 0 : i32
    return %c0_i32, %c0_i32_0 : i32, i32
  }
  func.func @transform_11(%arg0: i32) -> (i32, i32) {
    %c0_i32 = arith.constant 0 : i32
    %c0_i32_0 = arith.constant 0 : i32
    %c0_i32_1 = arith.constant 0 : i32
    return %c0_i32, %c0_i32_0 : i32, i32
  }
  func.func @transform_12(%arg0: i32) -> (i32, i32) {
    %c0_i32 = arith.constant 0 : i32
    %c0_i32_0 = arith.constant 0 : i32
    %c0_i32_1 = arith.constant 0 : i32
    return %c0_i32, %c0_i32_0 : i32, i32
  }
  func.func @transform_13(%arg0: i32) -> (i32, i32) {
    %c0_i32 = arith.constant 0 : i32
    %c0_i32_0 = arith.constant 0 : i32
    %c0_i32_1 = arith.constant 0 : i32
    return %c0_i32, %c0_i32_0 : i32, i32
  }
  func.func @transform_14(%arg0: i32) -> (i32, i32, i32) {
    %c0_i32 = arith.constant 0 : i32
    %c0_i32_0 = arith.constant 0 : i32
    %c0_i32_1 = arith.constant 0 : i32
    return %arg0, %c0_i32, %c0_i32_0 : i32, i32, i32
  }
}

module attributes {stable_mosaic.version = 11 : i64} {
  func.func @encoder_layer_kernel(%arg0: i32, %arg1: memref<1x8x32xf32, #tpu.memory_space<vmem>>, %arg2: memref<1x8x8xbf16, #tpu.memory_space<vmem>>, %arg3: memref<32x192xbf16, #tpu.memory_space<vmem>>, %arg4: memref<1x192xf32, #tpu.memory_space<vmem>>, %arg5: memref<2x32x32xbf16, #tpu.memory_space<vmem>>, %arg6: memref<1x32xf32, #tpu.memory_space<vmem>>, %arg7: memref<32x32xbf16, #tpu.memory_space<vmem>>, %arg8: memref<1x32xf32, #tpu.memory_space<vmem>>, %arg9: memref<32x32xbf16, #tpu.memory_space<vmem>>, %arg10: memref<1x32xf32, #tpu.memory_space<vmem>>, %arg11: memref<1x32xf32, #tpu.memory_space<vmem>>, %arg12: memref<1x32xf32, #tpu.memory_space<vmem>>, %arg13: memref<1x32xf32, #tpu.memory_space<vmem>>, %arg14: memref<1x32xf32, #tpu.memory_space<vmem>>, %arg15: memref<1x8x32xf32, #tpu.memory_space<vmem>>, %arg16: memref<8x192xbf16, #tpu.memory_space<vmem>>, %arg17: memref<8x32xf32, #tpu.memory_space<vmem>>) attributes {dimension_semantics = [#tpu.dimension_semantics<parallel>], iteration_bounds = array<i64: 2>, scalar_prefetch = 0 : i64, scratch_operands = 2 : i64, tpu.core_type = #tpu.core_type<tc>, window_params = [{transform_indices = @transform_0, window_bounds = array<i64: 1, 8, 32>}, {transform_indices = @transform_1, window_bounds = array<i64: 1, 8, 8>}, {pipeline_mode = #tpu.pipeline_mode<synchronous>, transform_indices = @transform_2, window_bounds = array<i64: 32, 192>}, {pipeline_mode = #tpu.pipeline_mode<synchronous>, transform_indices = @transform_3, window_bounds = array<i64: 1, 192>}, {pipeline_mode = #tpu.pipeline_mode<synchronous>, transform_indices = @transform_4, window_bounds = array<i64: 2, 32, 32>}, {pipeline_mode = #tpu.pipeline_mode<synchronous>, transform_indices = @transform_5, window_bounds = array<i64: 1, 32>}, {pipeline_mode = #tpu.pipeline_mode<synchronous>, transform_indices = @transform_6, window_bounds = array<i64: 32, 32>}, {pipeline_mode = #tpu.pipeline_mode<synchronous>, transform_indices = @transform_7, window_bounds = array<i64: 1, 32>}, {pipeline_mode = #tpu.pipeline_mode<synchronous>, transform_indices = @transform_8, window_bounds = array<i64: 32, 32>}, {pipeline_mode = #tpu.pipeline_mode<synchronous>, transform_indices = @transform_9, window_bounds = array<i64: 1, 32>}, {pipeline_mode = #tpu.pipeline_mode<synchronous>, transform_indices = @transform_10, window_bounds = array<i64: 1, 32>}, {pipeline_mode = #tpu.pipeline_mode<synchronous>, transform_indices = @transform_11, window_bounds = array<i64: 1, 32>}, {pipeline_mode = #tpu.pipeline_mode<synchronous>, transform_indices = @transform_12, window_bounds = array<i64: 1, 32>}, {pipeline_mode = #tpu.pipeline_mode<synchronous>, transform_indices = @transform_13, window_bounds = array<i64: 1, 32>}, {transform_indices = @transform_14, window_bounds = array<i64: 1, 8, 32>}]} {
    %c0 = arith.constant 0 : index
    %c0_0 = arith.constant 0 : index
    %c0_1 = arith.constant 0 : index
    %0 = vector.load %arg1[%c0, %c0_0, %c0_1] : memref<1x8x32xf32, #tpu.memory_space<vmem>>, vector<1x8x32xf32>
    %1 = vector.shape_cast %0 : vector<1x8x32xf32> to vector<8x32xf32>
    %2 = arith.truncf %1 : vector<8x32xf32> to vector<8x32xbf16>
    %c0_2 = arith.constant 0 : index
    %c0_3 = arith.constant 0 : index
    %3 = vector.load %arg3[%c0_2, %c0_3] : memref<32x192xbf16, #tpu.memory_space<vmem>>, vector<32x192xbf16>
    %cst = arith.constant dense<0.000000e+00> : vector<8x192xf32>
    %4 = tpu.matmul %2, %3, %cst {dimension_numbers = #tpu.dot_dimension_numbers<[1], [0], [0], [1], [0, 0, 1, 1], [], []>} : vector<8x32xbf16>, vector<32x192xbf16>, vector<8x192xf32> -> vector<8x192xf32>
    %c0_4 = arith.constant 0 : index
    %c0_5 = arith.constant 0 : index
    %5 = vector.load %arg4[%c0_4, %c0_5] : memref<1x192xf32, #tpu.memory_space<vmem>>, vector<1x192xf32>
    %6 = vector.broadcast %5 : vector<1x192xf32> to vector<8x192xf32>
    %7 = arith.addf %4, %6 : vector<8x192xf32>
    %8 = arith.truncf %7 : vector<8x192xf32> to vector<8x192xbf16>
    %c0_6 = arith.constant 0 : index
    %c0_7 = arith.constant 0 : index
    %9 = vector.load %arg16[%c0_6, %c0_7] : memref<8x192xbf16, #tpu.memory_space<vmem>>, vector<8x192xbf16>
    tpu.vector_store %arg16[%c0_6, %c0_7], %8 {strides = array<i32>} : memref<8x192xbf16, #tpu.memory_space<vmem>>, vector<8x192xbf16>,
    %c0_8 = arith.constant 0 : index
    %c0_9 = arith.constant 0 : index
    %c0_10 = arith.constant 0 : index
    %10 = vector.load %arg2[%c0_8, %c0_9, %c0_10] : memref<1x8x8xbf16, #tpu.memory_space<vmem>>, vector<1x8x8xbf16>
    %11 = vector.shape_cast %10 : vector<1x8x8xbf16> to vector<8x8xbf16>
    %12 = arith.extf %11 : vector<8x8xbf16> to vector<8x8xf32>
    %cst_11 = arith.constant 0.000000e+00 : f32
    %13 = vector.broadcast %cst_11 : f32 to vector<8x32xf32>
    %c0_12 = arith.constant 0 : index
    %c0_13 = arith.constant 0 : index
    %14 = vector.load %arg16[%c0_12, %c0_13] : memref<8x192xbf16, #tpu.memory_space<vmem>>, vector<8x32xbf16>
    %c0_14 = arith.constant 0 : index
    %c64 = arith.constant 64 : index
    %15 = vector.load %arg16[%c0_14, %c64] : memref<8x192xbf16, #tpu.memory_space<vmem>>, vector<8x32xbf16>
    %c0_15 = arith.constant 0 : index
    %c128 = arith.constant 128 : index
    %16 = vector.load %arg16[%c0_15, %c128] : memref<8x192xbf16, #tpu.memory_space<vmem>>, vector<8x32xbf16>
    %cst_16 = arith.constant dense<0.000000e+00> : vector<8x8xf32>
    %17 = tpu.matmul %14, %15, %cst_16 {dimension_numbers = #tpu.dot_dimension_numbers<[1], [1], [0], [0], [0, 0, 1, 0], [], []>} : vector<8x32xbf16>, vector<8x32xbf16>, vector<8x8xf32> -> vector<8x8xf32>
    %18 = arith.addf %17, %12 : vector<8x8xf32>
    %cst_17 = arith.constant dense<0xFF800000> : vector<8xf32>
    %19 = vector.multi_reduction <maximumf>, %18, %cst_17 [1] : vector<8x8xf32> to vector<8xf32>
    %20 = vector.shape_cast %19 : vector<8xf32> to vector<8x1xf32>
    %21 = vector.broadcast %20 : vector<8x1xf32> to vector<8x8xf32>
    %22 = arith.subf %18, %21 : vector<8x8xf32>
    %23 = math.exp %22 : vector<8x8xf32>
    %cst_18 = arith.constant dense<0.000000e+00> : vector<8xf32>
    %24 = vector.multi_reduction <add>, %23, %cst_18 [1] : vector<8x8xf32> to vector<8xf32>
    %25 = vector.shape_cast %24 : vector<8xf32> to vector<8x1xf32>
    %26 = tpu.reciprocal %25 {approx = true} : vector<8x1xf32> -> vector<8x1xf32>
    %27 = vector.broadcast %26 : vector<8x1xf32> to vector<8x8xf32>
    %28 = arith.mulf %23, %27 : vector<8x8xf32>
    %29 = arith.truncf %28 : vector<8x8xf32> to vector<8x8xbf16>
    %cst_19 = arith.constant dense<0.000000e+00> : vector<8x32xf32>
    %30 = tpu.matmul %29, %16, %cst_19 {dimension_numbers = #tpu.dot_dimension_numbers<[1], [0], [0], [1], [0, 0, 1, 1], [], []>} : vector<8x8xbf16>, vector<8x32xbf16>, vector<8x32xf32> -> vector<8x32xf32>
    %31 = arith.truncf %30 : vector<8x32xf32> to vector<8x32xbf16>
    %c0_20 = arith.constant 0 : index
    %c0_21 = arith.constant 0 : index
    %c0_22 = arith.constant 0 : index
    %32 = vector.load %arg5[%c0_20, %c0_21, %c0_22] : memref<2x32x32xbf16, #tpu.memory_space<vmem>>, vector<1x32x32xbf16>
    %33 = vector.shape_cast %32 : vector<1x32x32xbf16> to vector<32x32xbf16>
    %cst_23 = arith.constant dense<0.000000e+00> : vector<8x32xf32>
    %34 = tpu.matmul %31, %33, %cst_23 {dimension_numbers = #tpu.dot_dimension_numbers<[1], [0], [0], [1], [0, 0, 1, 1], [], []>} : vector<8x32xbf16>, vector<32x32xbf16>, vector<8x32xf32> -> vector<8x32xf32>
    %35 = arith.addf %13, %34 : vector<8x32xf32>
    %c0_24 = arith.constant 0 : index
    %c32 = arith.constant 32 : index
    %36 = vector.load %arg16[%c0_24, %c32] : memref<8x192xbf16, #tpu.memory_space<vmem>>, vector<8x32xbf16>
    %c0_25 = arith.constant 0 : index
    %c96 = arith.constant 96 : index
    %37 = vector.load %arg16[%c0_25, %c96] : memref<8x192xbf16, #tpu.memory_space<vmem>>, vector<8x32xbf16>
    %c0_26 = arith.constant 0 : index
    %c160 = arith.constant 160 : index
    %38 = vector.load %arg16[%c0_26, %c160] : memref<8x192xbf16, #tpu.memory_space<vmem>>, vector<8x32xbf16>
    %cst_27 = arith.constant dense<0.000000e+00> : vector<8x8xf32>
    %39 = tpu.matmul %36, %37, %cst_27 {dimension_numbers = #tpu.dot_dimension_numbers<[1], [1], [0], [0], [0, 0, 1, 0], [], []>} : vector<8x32xbf16>, vector<8x32xbf16>, vector<8x8xf32> -> vector<8x8xf32>
    %40 = arith.addf %39, %12 : vector<8x8xf32>
    %cst_28 = arith.constant dense<0xFF800000> : vector<8xf32>
    %41 = vector.multi_reduction <maximumf>, %40, %cst_28 [1] : vector<8x8xf32> to vector<8xf32>
    %42 = vector.shape_cast %41 : vector<8xf32> to vector<8x1xf32>
    %43 = vector.broadcast %42 : vector<8x1xf32> to vector<8x8xf32>
    %44 = arith.subf %40, %43 : vector<8x8xf32>
    %45 = math.exp %44 : vector<8x8xf32>
    %cst_29 = arith.constant dense<0.000000e+00> : vector<8xf32>
    %46 = vector.multi_reduction <add>, %45, %cst_29 [1] : vector<8x8xf32> to vector<8xf32>
    %47 = vector.shape_cast %46 : vector<8xf32> to vector<8x1xf32>
    %48 = tpu.reciprocal %47 {approx = true} : vector<8x1xf32> -> vector<8x1xf32>
    %49 = vector.broadcast %48 : vector<8x1xf32> to vector<8x8xf32>
    %50 = arith.mulf %45, %49 : vector<8x8xf32>
    %51 = arith.truncf %50 : vector<8x8xf32> to vector<8x8xbf16>
    %cst_30 = arith.constant dense<0.000000e+00> : vector<8x32xf32>
    %52 = tpu.matmul %51, %38, %cst_30 {dimension_numbers = #tpu.dot_dimension_numbers<[1], [0], [0], [1], [0, 0, 1, 1], [], []>} : vector<8x8xbf16>, vector<8x32xbf16>, vector<8x32xf32> -> vector<8x32xf32>
    %53 = arith.truncf %52 : vector<8x32xf32> to vector<8x32xbf16>
    %c1 = arith.constant 1 : index
    %c0_31 = arith.constant 0 : index
    %c0_32 = arith.constant 0 : index
    %54 = vector.load %arg5[%c1, %c0_31, %c0_32] : memref<2x32x32xbf16, #tpu.memory_space<vmem>>, vector<1x32x32xbf16>
    %55 = vector.shape_cast %54 : vector<1x32x32xbf16> to vector<32x32xbf16>
    %cst_33 = arith.constant dense<0.000000e+00> : vector<8x32xf32>
    %56 = tpu.matmul %53, %55, %cst_33 {dimension_numbers = #tpu.dot_dimension_numbers<[1], [0], [0], [1], [0, 0, 1, 1], [], []>} : vector<8x32xbf16>, vector<32x32xbf16>, vector<8x32xf32> -> vector<8x32xf32>
    %57 = arith.addf %35, %56 : vector<8x32xf32>
    %c0_34 = arith.constant 0 : index
    %c0_35 = arith.constant 0 : index
    %58 = vector.load %arg17[%c0_34, %c0_35] : memref<8x32xf32, #tpu.memory_space<vmem>>, vector<8x32xf32>
    tpu.vector_store %arg17[%c0_34, %c0_35], %57 {strides = array<i32>} : memref<8x32xf32, #tpu.memory_space<vmem>>, vector<8x32xf32>,
    %c0_36 = arith.constant 0 : index
    %c0_37 = arith.constant 0 : index
    %59 = vector.load %arg17[%c0_36, %c0_37] : memref<8x32xf32, #tpu.memory_space<vmem>>, vector<8x32xf32>
    %c0_38 = arith.constant 0 : index
    %c0_39 = arith.constant 0 : index
    %60 = vector.load %arg6[%c0_38, %c0_39] : memref<1x32xf32, #tpu.memory_space<vmem>>, vector<1x32xf32>
    %61 = vector.broadcast %60 : vector<1x32xf32> to vector<8x32xf32>
    %62 = arith.addf %59, %61 : vector<8x32xf32>
    %63 = arith.addf %62, %1 : vector<8x32xf32>
    %c0_40 = arith.constant 0 : index
    %c0_41 = arith.constant 0 : index
    %64 = vector.load %arg11[%c0_40, %c0_41] : memref<1x32xf32, #tpu.memory_space<vmem>>, vector<1x32xf32>
    %c0_42 = arith.constant 0 : index
    %c0_43 = arith.constant 0 : index
    %65 = vector.load %arg12[%c0_42, %c0_43] : memref<1x32xf32, #tpu.memory_space<vmem>>, vector<1x32xf32>
    %cst_44 = arith.constant dense<0.000000e+00> : vector<8xf32>
    %66 = vector.multi_reduction <add>, %63, %cst_44 [1] : vector<8x32xf32> to vector<8xf32>
    %67 = vector.shape_cast %66 : vector<8xf32> to vector<8x1xf32>
    %cst_45 = arith.constant 3.200000e+01 : f32
    %68 = vector.broadcast %cst_45 : f32 to vector<8x1xf32>
    %69 = arith.divf %67, %68 : vector<8x1xf32>
    %70 = vector.broadcast %69 : vector<8x1xf32> to vector<8x32xf32>
    %71 = arith.subf %63, %70 : vector<8x32xf32>
    %72 = arith.mulf %71, %71 : vector<8x32xf32>
    %cst_46 = arith.constant dense<0.000000e+00> : vector<8xf32>
    %73 = vector.multi_reduction <add>, %72, %cst_46 [1] : vector<8x32xf32> to vector<8xf32>
    %74 = vector.shape_cast %73 : vector<8xf32> to vector<8x1xf32>
    %cst_47 = arith.constant 3.200000e+01 : f32
    %75 = vector.broadcast %cst_47 : f32 to vector<8x1xf32>
    %76 = arith.divf %74, %75 : vector<8x1xf32>
    %77 = vector.broadcast %69 : vector<8x1xf32> to vector<8x32xf32>
    %78 = arith.subf %63, %77 : vector<8x32xf32>
    %cst_48 = arith.constant 9.99999974E-6 : f32
    %79 = vector.broadcast %cst_48 : f32 to vector<8x1xf32>
    %80 = arith.addf %76, %79 : vector<8x1xf32>
    %81 = math.rsqrt %80 : vector<8x1xf32>
    %82 = vector.broadcast %81 : vector<8x1xf32> to vector<8x32xf32>
    %83 = arith.mulf %78, %82 : vector<8x32xf32>
    %84 = vector.broadcast %64 : vector<1x32xf32> to vector<8x32xf32>
    %85 = arith.mulf %83, %84 : vector<8x32xf32>
    %86 = vector.broadcast %65 : vector<1x32xf32> to vector<8x32xf32>
    %87 = arith.addf %85, %86 : vector<8x32xf32>
    %88 = arith.truncf %87 : vector<8x32xf32> to vector<8x32xbf16>
    %c0_49 = arith.constant 0 : index
    %c0_50 = arith.constant 0 : index
    %89 = vector.load %arg7[%c0_49, %c0_50] : memref<32x32xbf16, #tpu.memory_space<vmem>>, vector<32x32xbf16>
    %cst_51 = arith.constant dense<0.000000e+00> : vector<8x32xf32>
    %90 = tpu.matmul %88, %89, %cst_51 {dimension_numbers = #tpu.dot_dimension_numbers<[1], [0], [0], [1], [0, 0, 1, 1], [], []>} : vector<8x32xbf16>, vector<32x32xbf16>, vector<8x32xf32> -> vector<8x32xf32>
    %c0_52 = arith.constant 0 : index
    %c0_53 = arith.constant 0 : index
    %91 = vector.load %arg8[%c0_52, %c0_53] : memref<1x32xf32, #tpu.memory_space<vmem>>, vector<1x32xf32>
    %92 = vector.broadcast %91 : vector<1x32xf32> to vector<8x32xf32>
    %93 = arith.addf %90, %92 : vector<8x32xf32>
    %cst_54 = arith.constant 0.000000e+00 : f32
    %94 = vector.broadcast %cst_54 : f32 to vector<8x32xf32>
    %95 = arith.maximumf %93, %94 : vector<8x32xf32>
    %96 = arith.truncf %95 : vector<8x32xf32> to vector<8x32xbf16>
    %c0_55 = arith.constant 0 : index
    %c0_56 = arith.constant 0 : index
    %97 = vector.load %arg9[%c0_55, %c0_56] : memref<32x32xbf16, #tpu.memory_space<vmem>>, vector<32x32xbf16>
    %cst_57 = arith.constant dense<0.000000e+00> : vector<8x32xf32>
    %98 = tpu.matmul %96, %97, %cst_57 {dimension_numbers = #tpu.dot_dimension_numbers<[1], [0], [0], [1], [0, 0, 1, 1], [], []>} : vector<8x32xbf16>, vector<32x32xbf16>, vector<8x32xf32> -> vector<8x32xf32>
    %c0_58 = arith.constant 0 : index
    %c0_59 = arith.constant 0 : index
    %99 = vector.load %arg10[%c0_58, %c0_59] : memref<1x32xf32, #tpu.memory_space<vmem>>, vector<1x32xf32>
    %100 = vector.broadcast %99 : vector<1x32xf32> to vector<8x32xf32>
    %101 = arith.addf %98, %100 : vector<8x32xf32>
    %102 = arith.addf %101, %87 : vector<8x32xf32>
    %c0_60 = arith.constant 0 : index
    %c0_61 = arith.constant 0 : index
    %103 = vector.load %arg13[%c0_60, %c0_61] : memref<1x32xf32, #tpu.memory_space<vmem>>, vector<1x32xf32>
    %c0_62 = arith.constant 0 : index
    %c0_63 = arith.constant 0 : index
    %104 = vector.load %arg14[%c0_62, %c0_63] : memref<1x32xf32, #tpu.memory_space<vmem>>, vector<1x32xf32>
    %cst_64 = arith.constant dense<0.000000e+00> : vector<8xf32>
    %105 = vector.multi_reduction <add>, %102, %cst_64 [1] : vector<8x32xf32> to vector<8xf32>
    %106 = vector.shape_cast %105 : vector<8xf32> to vector<8x1xf32>
    %cst_65 = arith.constant 3.200000e+01 : f32
    %107 = vector.broadcast %cst_65 : f32 to vector<8x1xf32>
    %108 = arith.divf %106, %107 : vector<8x1xf32>
    %109 = vector.broadcast %108 : vector<8x1xf32> to vector<8x32xf32>
    %110 = arith.subf %102, %109 : vector<8x32xf32>
    %111 = arith.mulf %110, %110 : vector<8x32xf32>
    %cst_66 = arith.constant dense<0.000000e+00> : vector<8xf32>
    %112 = vector.multi_reduction <add>, %111, %cst_66 [1] : vector<8x32xf32> to vector<8xf32>
    %113 = vector.shape_cast %112 : vector<8xf32> to vector<8x1xf32>
    %cst_67 = arith.constant 3.200000e+01 : f32
    %114 = vector.broadcast %cst_67 : f32 to vector<8x1xf32>
    %115 = arith.divf %113, %114 : vector<8x1xf32>
    %116 = vector.broadcast %108 : vector<8x1xf32> to vector<8x32xf32>
    %117 = arith.subf %102, %116 : vector<8x32xf32>
    %cst_68 = arith.constant 9.99999974E-6 : f32
    %118 = vector.broadcast %cst_68 : f32 to vector<8x1xf32>
    %119 = arith.addf %115, %118 : vector<8x1xf32>
    %120 = math.rsqrt %119 : vector<8x1xf32>
    %121 = vector.broadcast %120 : vector<8x1xf32> to vector<8x32xf32>
    %122 = arith.mulf %117, %121 : vector<8x32xf32>
    %123 = vector.broadcast %103 : vector<1x32xf32> to vector<8x32xf32>
    %124 = arith.mulf %122, %123 : vector<8x32xf32>
    %125 = vector.broadcast %104 : vector<1x32xf32> to vector<8x32xf32>
    %126 = arith.addf %124, %125 : vector<8x32xf32>
    %127 = vector.shape_cast %126 : vector<8x32xf32> to vector<1x8x32xf32>
    %c0_69 = arith.constant 0 : index
    %c0_70 = arith.constant 0 : index
    %c0_71 = arith.constant 0 : index
    %128 = vector.load %arg15[%c0_69, %c0_70, %c0_71] : memref<1x8x32xf32, #tpu.memory_space<vmem>>, vector<1x8x32xf32>
    tpu.vector_store %arg15[%c0_69, %c0_70, %c0_71], %127 {strides = array<i32>} : memref<1x8x32xf32, #tpu.memory_space<vmem>>, vector<1x8x32xf32>,
    return
  }
  func.func @transform_0(%arg0: i32) -> (i32, i32, i32) {
    %c0_i32 = arith.constant 0 : i32
    %c0_i32_0 = arith.constant 0 : i32
    %c0_i32_1 = arith.constant 0 : i32
    return %arg0, %c0_i32, %c0_i32_0 : i32, i32, i32
  }
  func.func @transform_1(%arg0: i32) -> (i32, i32, i32) {
    %c0_i32 = arith.constant 0 : i32
    %c0_i32_0 = arith.constant 0 : i32
    %c0_i32_1 = arith.constant 0 : i32
    return %arg0, %c0_i32, %c0_i32_0 : i32, i32, i32
  }
  func.func @transform_2(%arg0: i32) -> (i32, i32) {
    %c0_i32 = arith.constant 0 : i32
    %c0_i32_0 = arith.constant 0 : i32
    %c0_i32_1 = arith.constant 0 : i32
    return %c0_i32, %c0_i32_0 : i32, i32
  }
  func.func @transform_3(%arg0: i32) -> (i32, i32) {
    %c0_i32 = arith.constant 0 : i32
    %c0_i32_0 = arith.constant 0 : i32
    %c0_i32_1 = arith.constant 0 : i32
    return %c0_i32, %c0_i32_0 : i32, i32
  }
  func.func @transform_4(%arg0: i32) -> (i32, i32, i32) {
    %c0_i32 = arith.constant 0 : i32
    %c0_i32_0 = arith.constant 0 : i32
    %c0_i32_1 = arith.constant 0 : i32
    %c0_i32_2 = arith.constant 0 : i32
    return %c0_i32, %c0_i32_0, %c0_i32_1 : i32, i32, i32
  }
  func.func @transform_5(%arg0: i32) -> (i32, i32) {
    %c0_i32 = arith.constant 0 : i32
    %c0_i32_0 = arith.constant 0 : i32
    %c0_i32_1 = arith.constant 0 : i32
    return %c0_i32, %c0_i32_0 : i32, i32
  }
  func.func @transform_6(%arg0: i32) -> (i32, i32) {
    %c0_i32 = arith.constant 0 : i32
    %c0_i32_0 = arith.constant 0 : i32
    %c0_i32_1 = arith.constant 0 : i32
    return %c0_i32, %c0_i32_0 : i32, i32
  }
  func.func @transform_7(%arg0: i32) -> (i32, i32) {
    %c0_i32 = arith.constant 0 : i32
    %c0_i32_0 = arith.constant 0 : i32
    %c0_i32_1 = arith.constant 0 : i32
    return %c0_i32, %c0_i32_0 : i32, i32
  }
  func.func @transform_8(%arg0: i32) -> (i32, i32) {
    %c0_i32 = arith.constant 0 : i32
    %c0_i32_0 = arith.constant 0 : i32
    %c0_i32_1 = arith.constant 0 : i32
    return %c0_i32, %c0_i32_0 : i32, i32
  }
  func.func @transform_9(%arg0: i32) -> (i32, i32) {
    %c0_i32 = arith.constant 0 : i32
    %c0_i32_0 = arith.constant 0 : i32
    %c0_i32_1 = arith.constant 0 : i32
    return %c0_i32, %c0_i32_0 : i32, i32
  }
  func.func @transform_10(%arg0: i32) -> (i32, i32) {
    %c0_i32 = arith.constant 0 : i32
    %c0_i32_0 = arith.constant 0 : i32
    %c0_i32_1 = arith.constant 0 : i32
    return %c0_i32, %c0_i32_0 : i32, i32
  }
  func.func @transform_11(%arg0: i32) -> (i32, i32) {
    %c0_i32 = arith.constant 0 : i32
    %c0_i32_0 = arith.constant 0 : i32
    %c0_i32_1 = arith.constant 0 : i32
    return %c0_i32, %c0_i32_0 : i32, i32
  }
  func.func @transform_12(%arg0: i32) -> (i32, i32) {
    %c0_i32 = arith.constant 0 : i32
    %c0_i32_0 = arith.constant 0 : i32
    %c0_i32_1 = arith.constant 0 : i32
    return %c0_i32, %c0_i32_0 : i32, i32
  }
  func.func @transform_13(%arg0: i32) -> (i32, i32) {
    %c0_i32 = arith.constant 0 : i32
    %c0_i32_0 = arith.constant 0 : i32
    %c0_i32_1 = arith.constant 0 : i32
    return %c0_i32, %c0_i32_0 : i32, i32
  }
  func.func @transform_14(%arg0: i32) -> (i32, i32, i32) {
    %c0_i32 = arith.constant 0 : i32
    %c0_i32_0 = arith.constant 0 : i32
    %c0_i32_1 = arith.constant 0 : i32
    return %arg0, %c0_i32, %c0_i32_0 : i32, i32, i32
  }
}

</mosaic_0001>

<bundles_post_ra>
// kernel: tpu_custom_call.1
= control target key start
LH: loop header
LB: loop body
LE: loop exit
PB: predicated region body
PF: predicated region fallthrough
CT: control target
= control target key end

     0   :  { %s1976_s0 = inlined_call_operand.hbm [shape: f32[2,8,32], index: 0, kind: input, shape index: {}]   ;;  %s1977_s1 = inlined_call_operand.hbm [shape: bf16[2,8,8], index: 1, kind: input, shape index: {}]   ;;  %s1978_s2 = inlined_call_operand.hbm [shape: bf16[32,192], index: 2, kind: input, shape index: {}]   ;;  %s1979_s3 = inlined_call_operand.vmem [shape: f32[1,192], index: 3, kind: input, shape index: {}]   ;;  %s1980_s4 = inlined_call_operand.hbm [shape: bf16[2,32,32], index: 4, kind: input, shape index: {}]   ;;  %s1981_s5 = inlined_call_operand.vmem [shape: f32[1,32], index: 5, kind: input, shape index: {}]   ;;  %s1982_s6 = inlined_call_operand.hbm [shape: bf16[32,32], index: 6, kind: input, shape index: {}]   ;;  %s1983_s7 = inlined_call_operand.vmem [shape: f32[1,32], index: 7, kind: input, shape index: {}]   ;;  %s1984_s8 = inlined_call_operand.hbm [shape: bf16[32,32], index: 8, kind: input, shape index: {}]   ;;  %s1985_s9 = inlined_call_operand.vmem [shape: f32[1,32], index: 9, kind: input, shape index: {}]   ;;  %s1986_s10 = inlined_call_operand.vmem [shape: f32[1,32], index: 10, kind: input, shape index: {}]   ;;  %s1987_s11 = inlined_call_operand.vmem [shape: f32[1,32], index: 11, kind: input, shape index: {}]   ;;  %s1988_s12 = inlined_call_operand.vmem [shape: f32[1,32], index: 12, kind: input, shape index: {}]   ;;  %s1989_s13 = inlined_call_operand.vmem [shape: f32[1,32], index: 13, kind: input, shape index: {}]   ;;  %s1990_s14 = inlined_call_operand.hbm [shape: f32[2,8,32], index: 14, kind: output, shape index: {}]  }
   0x1   :  { %1999 = sst [smem:[#allocation28_spill]] %s1978_s2 }
   0x2   :  { %2000 = sst [smem:[#allocation29_spill]] %s1980_s4 }
   0x3   :  { %2001 = sst [smem:[#allocation30_spill]] %s1982_s6 }
   0x4   :  { %2002 = sst [smem:[#allocation31_spill]] %s1984_s8 }
   0x5   :  { %2003 = sst [smem:[#allocation32_spill]] %s1988_s12 }
   0x6   :  { %2004 = sst [smem:[#allocation33_spill]] %s1989_s13 }
   0x7   :  { %2005 = sst [smem:[#allocation34_spill]] %s1990_s14 }
   0x8   :  { %19 = vsyncpa [#allocation5], 0 }
   0x9   :  { %21 = vsyncpa [#allocation5 + $0x1], 0 }
   0xa   :  { %22 = vsyncpa [#allocation8], 0 }
   0xb   :  { %24 = vsyncpa [#allocation8 + $0x1], 0 }
   0xc   :  { %25 = vsyncpa [#allocation11], 0 }
   0xd   :  { %26 = vsyncpa [#allocation14], 0 }
   0xe   :  { %27 = vsyncpa [#allocation6], 0 }
   0xf   :  { %29 = vsyncpa [#allocation6 + $0x1], 0  ;;  %s1712_s29 = smov 0   ;;  %s1714_s30 = smov 0  }
  0x10   :  { %s1716_s15 = smov 0   ;;  %s1718_s16 = smov 0  }
  0x11 LB: > { %2006 = sst [smem:[#allocation22_spill]] %s1611_s29  ;;  %s1736_s20 = sadd.s32 4294967295, %s1623_s16   ;;  %s1623_s16 = sphi %s1718_s16, %s2030_s16   ;;  %s1619_s15 = sphi %s1716_s15, %s2032_s15   ;;  %s1615_s30 = sphi %s1714_s30, %s2034_s30   ;;  %s1611_s29 = sphi %s1712_s29, %s2033_s29  }
  0x12   : > { %2007 = sst [smem:[#allocation23_spill]] %s1619_s15  ;;  %p1148_p0 = scmp.ge.s32.totalorder %s1623_s16, 1 }
  0x13   : > { %s2008_s2 = sld [smem:[#allocation28_spill]]  ;;  %p56_p1 = scmp.eq.s32.totalorder %s1736_s20, 0 }
  0x14   : > { %p370_p2 = scmp.lt.s32.totalorder %s1623_s16, 3  ;;  %s1625_s22 = smov [#allocation9]  }
  0x15   : > { %s383_s23 = sshll.u32 %s1625_s22, 4  ;;  %s2010_s4 = sld [smem:[#allocation29_spill]]  ;;  %s384_s23 = int_to_ptr.vmem [resolvable:$true] %s383_s23 }
  0x16   : > { %p1741_p3 = pnand %p1148_p0, %p370_p2  ;;  %s1626_s28 = smov [#allocation10]  }
  0x17   : > { %s400_s17 = sshll.u32 %s1626_s28, 4  ;;  %s1627_s18 = smov 128   ;;  %s401_s17 = int_to_ptr.vmem [resolvable:$true] %s400_s17 }
  0x18   : > { %p1262_p4 = pneg %p1741_p3  ;;  %s1628_s22 = smov 8  }
  0x19   : > { %s381_s19 = sshll.u32 %s2008_s2, 4  ;;  %s1629_s24 = smov 64   ;;  %s382_s19 = int_to_ptr.hbm [resolvable:$true] %s381_s19 }
  0x1a   : > { %p1753_p6 = pnand %p1262_p4, %p56_p1  ;;  %s1630_s25 = smov 4  }
  0x1b   : > { %s398_s26 = sshll.u32 %s2010_s4, 4  ;;  %s2012_s6 = sld [smem:[#allocation30_spill]]  ;;  %s399_s26 = int_to_ptr.hbm [resolvable:$true] %s398_s26 }
  0x1c   : > { %1265 = dma.hbm_to_vmem [thread:$0]  (!%p1753_p6), %s382_s19, 512, %s384_s23, [#allocation8], %s1627_s18, %s1627_s18, %s1628_s22  }
  0x1d   : > { %1268 = dma.hbm_to_vmem [thread:$0]  (!%p1753_p6), %s399_s26, 512, %s401_s17, [#allocation11], %s1629_s24, %s1629_s24, %s1630_s25  }
  0x1e   : > { %s1631_s28 = smov [#allocation12]   ;;  %s2013_s8 = sld [smem:[#allocation31_spill]] }
  0x1f   : > { %s417_s19 = sshll.u32 %s1631_s28, 4  ;;  %s1632_s2 = smov [#allocation13]   ;;  %s418_s19 = int_to_ptr.vmem [resolvable:$true] %s417_s19 }
  0x20   : > { %s434_s4 = sshll.u32 %s1632_s2, 4  ;;  %s1147_s26 = sadd.s32 4294967294, %s1623_s16   ;;  %s435_s4 = int_to_ptr.vmem [resolvable:$true] %s434_s4 }
  0x21   : > { %s415_s13 = sshll.u32 %s2012_s6, 4  ;;  %s1773_s17 = sadd.s32 1, %s1623_s16   ;;  %s416_s13 = int_to_ptr.hbm [resolvable:$true] %s415_s13 }
  0x22   : > { %1271 = dma.hbm_to_vmem [thread:$0]  (!%p1753_p6), %s416_s13, 256, %s418_s19, [#allocation11], %s1629_s24, %s1629_s24, %s1630_s25  }
  0x23   : > { %2014 = sst [smem:[#allocation24_spill]] %s1773_s17  ;;  %s39_s28 = ssub.s32 %s1623_s16, %s1773_s17 }
  0x24   : > { %s432_s22 = sshll.u32 %s2013_s8, 4  ;;  %s42_s23 = sadd.s32 1, %s1619_s15  ;;  %s433_s22 = int_to_ptr.hbm [resolvable:$true] %s432_s22 }
  0x25   : > { %1274 = dma.hbm_to_vmem [thread:$0]  (!%p1753_p6), %s433_s22, 256, %s435_s4, [#allocation14], %s1629_s24, %s1629_s24, %s1630_s25  }
  0x26   : > { %p40_p7 = scmp.eq.s32.totalorder %s39_s28, 0  ;;  %p49_p8 = scmp.ne.s32.totalorder %s1619_s15, %s1615_s30 }
  0x27   : > { %p50_p9 = scmp.eq.s32.totalorder %s1623_s16, 0  ;;  %p55_p10 = scmp.ne.s32.totalorder %s1615_s30, %s1611_s29 }
  0x28   : > { %s1784_s13 = scalar_select %p40_p7, %s1619_s15, %s42_s23  }
  0x29   : > { %p1786_p11 = por %p50_p9, %p49_p8  ;;  %p1792_p12 = por %p56_p1, %p55_p10 }
  0x2a   : > { %2015 = sst [smem:[#allocation25_spill]] %s1784_s13  ;;  %p357_p13 = scmp.eq.s32.totalorder %s1736_s20, 1 }
  0x2b   : > { %p363_p0 = scmp.eq.s32.totalorder %s1147_s26, 1  ;;  %p1290_p2 = scmp.lt.s32.totalorder %s1623_s16, 2 }
  0x2c   : > { %s1799_s24 = sand.u32 1, %s1619_s15   ;;  %p1801_p4 = por %p357_p13, %p49_p8 }
  0x2d   : > { %p1805_p6 = por %p363_p0, %p55_p10  ;;  %s1154_s22 = sshll.u32 %s1799_s24, 3 }
  0x2e   : > { %s2018_s25 = scalar_select %p1801_p4, 1, 0 }
  0x2f   : > { %s2020_s18 = scalar_select %p1805_p6, 1, 0 }
  0x30   : > { %2019 = sst [smem:[#allocation26_spill]] %s2018_s25  ;;  %s1155_s2 = sshll.u32 %s1623_s16, 3 }
  0x31   : > { %2021 = sst [smem:[#allocation27_spill]] %s2020_s18  ;;  %s471_s26 = scalar_lea.hbm %s1976_s0, %s1155_s2 }
  0x32   : > { %s467_s23 = scalar_lea.vmem [#allocation4], %s1154_s22  ;;  %s473_s8 = sshll.u32 %s471_s26, 4  ;;  %s474_s8 = int_to_ptr.hbm [resolvable:$true] %s473_s8 }
  0x33   : > { %s475_s6 = sshll.u32 %s467_s23, 4  ;;  %p1816_p7 = pnand %p1290_p2, %p1786_p11  ;;  %s476_s6 = int_to_ptr.vmem [resolvable:$true] %s475_s6 }
  0x34   : > { %s482_s15 = sand.u32 1, %s1623_s16   ;;  %s1156_s17 = sshll.u32 %s1799_s24, 2 }
  0x35   : > { %s464_s18 = scalar_lea.sflag [#allocation5], %s1799_s24  ;;  %s1481_s29 = sshra.s32 %s474_s8, 4  ;;  %s1482_s29 = int_to_ptr.hbm [resolvable:$true] %s1481_s29 }
  0x36   : > { %s1483_s25 = scalar_lea.hbm %s1482_s29, 8  ;;  %p1485_p9 = pneg %p1816_p7 }
  0x37   : > { %p1484_p8 = scmp.ne.s32.totalorder %s1482_s29, %s1483_s25  ;;  %s1488_s2 = scalar_lea.hbm %s1976_s0, 16 }
  0x38   : > { %p1489_p11 = scmp.lt.s32.totalorder %s1482_s29, %s1976_s0  ;;  %p1490_p0 = scmp.lt.s32.totalorder %s1488_s2, %s1483_s25 }
  0x39   : > { %p1486_p10 = pnand %p1485_p9, %p1484_p8 }
  0x3a   : > { %p1491_p2 = por %p1490_p0, %p1489_p11 }
  0x3b   : > { %p1487_p13 = pneg %p1486_p10 }
  0x3d   : > { %p1492_p5 = pnand %p1491_p2, %p1487_p13 }
  0x3f   : > { %1495 = shalt.err (!%p1492_p5)
}
  0x40   : > { %1278 = dma.hbm_to_vmem [thread:$0]  (!%p1816_p7), %s474_s8, 128, %s476_s6, %s464_s18  }
  0x41   : > { %s1157_s24 = sshll.u32 %s1623_s16, 2  ;;  %s486_s19 = scalar_lea.vmem [#allocation7], %s1156_s17 }
  0x42   : > { %s490_s14 = scalar_lea.hbm %s1977_s1, %s1157_s24  ;;  %s494_s22 = sshll.u32 %s486_s19, 4  ;;  %s495_s22 = int_to_ptr.vmem [resolvable:$true] %s494_s22 }
  0x43   : > { %s492_s12 = sshll.u32 %s490_s14, 4  ;;  %s483_s29 = scalar_lea.sflag [#allocation8], %s482_s15  ;;  %s493_s12 = int_to_ptr.hbm [resolvable:$true] %s492_s12 }
  0x44   : > { %s1511_s25 = sshra.s32 %s493_s12, 4  ;;  %s1518_s18 = scalar_lea.hbm %s1977_s1, 8  ;;  %s1512_s25 = int_to_ptr.hbm [resolvable:$true] %s1511_s25 }
  0x45   : > { %s1513_s2 = scalar_lea.hbm %s1512_s25, 4  ;;  %p1519_p13 = scmp.lt.s32.totalorder %s1512_s25, %s1977_s1 }
  0x46   : > { %p1514_p5 = scmp.ne.s32.totalorder %s1512_s25, %s1513_s2  ;;  %p1520_p11 = scmp.lt.s32.totalorder %s1518_s18, %s1513_s2 }
  0x48   : > { %p1516_p8 = pnand %p1514_p5, %p1485_p9  ;;  %p1521_p0 = por %p1520_p11, %p1519_p13 }
  0x4a   : > { %p1517_p10 = pneg %p1516_p8 }
  0x4c   : > { %p1522_p2 = pnand %p1521_p0, %p1517_p10 }
  0x4e   : > { %1525 = shalt.err (!%p1522_p2)
}
  0x4f   : > { %1281 = dma.hbm_to_vmem [thread:$0]  (!%p1816_p7), %s493_s12, 64, %s495_s22, %s483_s29  }
  0x50   : > { %503 = sbr.rel (%p1741_p3) target bundleno = 2249 (0x8c9), region = 76  ;;  %s1854_s14 = sand.u32 (!%p1741_p3), 1, %s1615_s30  }
  0x51   : > { %s1159_s15 = sshll.u32 (!%p1741_p3), %s1854_s14, 3  ;;  %s506_s17 = scalar_lea.sflag (!%p1741_p3), [#allocation5], %s1854_s14 }
  0x52   : > { %s509_s24 = scalar_lea.vmem (!%p1741_p3), [#allocation4], %s1159_s15 }
  0x55   : > { %1586 = dma.done.wait (%p1792_p12), %s506_s17, 128  }
  0x56   : > { %1588 = vsyncadd (%p1792_p12), %s506_s17, 4294967168  ;;  %s515_s12 = sand.u32 1, %s1736_s20   ;;  %s1160_s21 = sshll.u32 %s1854_s14, 2 }
  0x57   : > { %s516_s13 = scalar_lea.sflag [#allocation8], %s515_s12  ;;  %s1866_s26 = scalar_lea.vmem [#allocation7], %s1160_s21 }
  0x58   : > { %1590 = dma.done.wait (%p1792_p12), %s516_s13, 64  }
  0x59   : > { %1592 = vsyncadd (%p1792_p12), %s516_s13, 4294967232 }
  0x5a   : > { %1594 = dma.done.wait (%p56_p1), [#allocation8], 512  }
  0x5b   : > { %1596 = vsyncadd (%p56_p1), [#allocation8], 4294966784 }
  0x5c   : > { %1598 = dma.done.wait (%p56_p1), [#allocation11], 768  }
  0x5d   : > { %1600 = vsyncadd (%p56_p1), [#allocation11], 4294966528 }
  0x5e   : > { %1602 = dma.done.wait (%p56_p1), [#allocation14], 256  }
  0x5f   : > { %1604 = vsyncadd (%p56_p1), [#allocation14], 4294967040  ;;  %v1176_v0 = vld [vmem:[#allocation9 + $0x10] sm:$0xf]  ;;  %v1231_v1 = vld [vmem:[#allocation9 + $0x14] sm:$0xf0] }
  0x60   : > { %v1230_v2 = vld [vmem:[#allocation9 + $0x14] sm:$0xf]  ;;  %v1177_v3 = vor.u32 %v1231_v1, %v1176_v0  ;;  %v1178_v4 = vld [vmem:[#allocation9 + $0x18] sm:$0xf0]  ;;  %v1168_v5 = vld [vmem:[#allocation9] sm:$0xf] }
  0x61   : > { %v1229_v6 = vld [vmem:[#allocation9 + $0x4] sm:$0xf0]  ;;  %v1181_v7 = vor.u32 %v1230_v2, %v1178_v4  ;;  %v1228_v8 = vld [vmem:[#allocation9 + $0x4] sm:$0xf]  ;;  %v1170_v9 = vld [vmem:[#allocation9 + $0x8] sm:$0xf0] }
  0x62   : > { %633 = vmatpush.bf16.msra.mxu0 %v1177_v3  ;;  %v1169_v10 = vor.u32 %v1229_v6, %v1168_v5  ;;  %v1884_v11 = vld [vmem:[%s509_s24] sm:$0xff]  ;;  %v1173_v12 = vor.u32 %v1228_v8, %v1170_v9  ;;  %vm623_vm0 = vcmask 261120   ;;  %v597_v14 = vld [vmem:[%s1979_s3] sm:$0x3]  ;;  %vm654_vm1 = vcmask 1043456   ;;  %s1633_s19 = smov 96  }
  0x63   : > { %646 = vmatpush.bf16.msra.mxu1 %v1181_v7  ;;  %v592_v13 = vpack.c.bf16 %v1884_v11, %v1884_v11  ;;  %v599_v15 = vperm.slane %v597_v14, 0  ;;  %v600_v16 = vperm.slane %v597_v14, 1  ;;  %vm655_vm2 = vcmask 523268   ;;  %s1634_s22 = smov 64   ;;  %v658_v31 = vld [vmem:[%s1866_s26] sm:$0xf] }
  0x64   : > { %vm656_vm3 = vmor %vm655_vm2, %vm654_vm1  ;;  %v659_v32 = vunpack.c.l.bf16 %v658_v31  ;;  %vm686_vm4 = vcmask 64512   ;;  %s1635_s29 = smov 32   ;;  %v1233_v43 = vld [vmem:[#allocation10 + $0x8] sm:$0xff]  ;;  %v1232_v50 = vld [vmem:[#allocation10] sm:$0xff]  ;;  %s1225_s21 = sshll.u32 %s1736_s20, 3 }
  0x65   : > { %v1235_v5 = vld [vmem:[#allocation10 + $0x18] sm:$0xff]  ;;  %s2023_s27 = sld [smem:[#allocation32_spill]]  ;;  %s589_s20 = scalar_lea.vmem [#allocation15], %s1159_s15 }
  0x66   : > { %634 = vmatpush.bf16.msra.mxu0 %v1169_v10  ;;  %v1234_v10 = vld [vmem:[#allocation10 + $0x10] sm:$0xff]  ;;  %s2026_s8 = sld [smem:[#allocation33_spill]]  ;;  %s1013_s18 = sshll.u32 %s589_s20, 4  ;;  %s1014_s18 = int_to_ptr.vmem [resolvable:$true] %s1013_s18 }
  0x67   : > { %647 = vmatpush.bf16.msra.mxu1 %v1173_v12  ;;  %s1001_s28 = scalar_lea.sflag [#allocation6], %s1854_s14 }
  0x69   : > { %1182 = vmatmul.msk.bf16.vlgmr.msra.gmra.mxu0 %vm623_vm0, %v592_v13 }
  0x6a   : > { %1183 = vmatmul.msk.bf16.vlgmr.msra.gmra.mxu1 %vm623_vm0, %v592_v13 }
  0x6b   : > { %809 = vmatpush.bf16.msrb.mxu1 %v1235_v5 }
  0x6f   : > { %810 = vmatpush.bf16.msrb.mxu1 %v1234_v10 }
  0xe6   : > { %v636_v17 = vpop.f32.mrf.mxu0 }
  0xe7   : > { %v637_v18 = vadd.f32 %v636_v17, %v599_v15  ;;  %v649_v19 = vpop.f32.mrf.mxu1  ;;  %v1340_v17 = vld [vmem:[%s1981_s5] ss:$0 sm:$0xff] }
  0xe8   : > { %v650_v20 = vadd.f32 %v649_v19, %v600_v16 }
  0xea   : > { %v653_v21 = vpack.c.bf16 %v650_v20, %v637_v18 }
  0xec   : > { %657 = vst.msk [vmem:[#allocation2] sm:$0xff] %vm656_vm3, %v653_v21 }
  0xee   : > { %v638_v22 = vpop.f32.mrf.mxu0 }
  0xef   : > { %v651_v23 = vpop.f32.mrf.mxu1 }
  0xf0   : > { %v1636_v23 = vmov 32.0  }
  0xf3   : > { %v661_v24 = vld [vmem:[#allocation2 + $0x4] sm:$0xf]  ;;  %v660_v25 = vld [vmem:[#allocation2] sm:$0xf] }
  0xf4   : > { %v703_v26 = vsel %vm654_vm1, %v661_v24, 0  ;;  %v663_v27 = vunpack.c.l.b16 %v660_v25  ;;  %v759_v58 = vunpack.c.l.b16 %v661_v24 }
  0xf5   : > { %712 = vmatpush.bf16.msra.mxu3 %v703_v26 }
  0xf6   : > { %v664_v28 = vpack.c.b16 %v663_v27, %v663_v27  ;;  %v760_v59 = vpack.c.b16 %v759_v58, %v759_v58 }
  0xf8   : > { %723 = vrot.lane.b32.xlu2 %v664_v28, %s1633_s19  ;;  %665 = vrot.lane.b32.xlu0 %v664_v28, %s1634_s22  ;;  %s2024_s22 = sld [smem:[#allocation34_spill]] }
  0xfe   : > { %s1561_s15 = scalar_lea.hbm %s2024_s22, 16 }
 0x152   : > { %v724_v49 = vpop.permute.xlu2 %723 }
 0x16a   : > { %v666_v29 = vpop.permute.xlu0 %665 }
 0x16b   : > { %v671_v30 = vsel %vm623_vm0, %v666_v29, 0 }
 0x16c   : > { %680 = vmatpush.bf16.xpose.msra.mxu2 %v671_v30 }
 0x173   : > { %1184 = vmatmul.msk.bf16.vlgmr.msra.gmra.mxu2 %vm623_vm0, %v660_v25 }
 0x174   : > { %837 = vmatpush.bf16.msrb.mxu2 %v1233_v43 }
 0x178   : > { %838 = vmatpush.bf16.msrb.mxu2 %v1232_v50 }
 0x1f6   : > { %v682_v33 = vpop.f32.mrf.mxu2 }
 0x1f7   : > { %v683_v34 = vadd.f32 %v682_v33, %v659_v32 }
 0x1f9   : > { %v687_v35 = vsel %vm686_vm4, %v683_v34, -inf }
 0x1fa   : > { %688 = vmax.xlane.f32.xlu0 %v687_v35  ;;  %v1236_v35 = vld [vmem:[#allocation12] sm:$0xff] }
 0x1fe   : > { %v684_v36 = vpop.f32.mrf.mxu2 }
 0x26d   : > { %v689_v37 = vpop.xlane.xlu0 %688 }
 0x26e   : > { %v690_v38 = vsub.f32 %v683_v34, %v689_v37 }
 0x270   : > { %v691_v39 = vmul.f32 1.442695, %v690_v38 }
 0x272   : > { %1347 = vpow2.f32 %v691_v39 }
 0x278   : > { %v1348_v40 = vpop.eup %1347 }
 0x279   : > { %v693_v41 = vsel %vm686_vm4, %v1348_v40, 0.0 }
 0x27a   : > { %694 = vadd.xlane.f32.xlu1 %v693_v41 }
 0x293   : > { %725 = vrot.lane.b32.xlu1 %v664_v28, %s1635_s29  ;;  %s1011_s29 = scalar_lea.hbm %s2024_s22, %s1225_s21 }
 0x294   : > { %s1015_s4 = sshll.u32 %s1011_s29, 4  ;;  %s1016_s4 = int_to_ptr.hbm [resolvable:$true] %s1015_s4 }
 0x295   : > { %s1555_s17 = sshra.s32 %s1016_s4, 4  ;;  %s1556_s17 = int_to_ptr.hbm [resolvable:$true] %s1555_s17 }
 0x296   : > { %s1557_s24 = scalar_lea.hbm %s1556_s17, 8  ;;  %p1562_p7 = scmp.lt.s32.totalorder %s1556_s17, %s2024_s22 }
 0x297   : > { %p1558_p1 = scmp.ne.s32.totalorder %s1556_s17, %s1557_s24  ;;  %p1563_p9 = scmp.lt.s32.totalorder %s1561_s15, %s1557_s24 }
 0x299   : > { %p1559_p3 = pnand %p1558_p1, %p1801_p4  ;;  %p1564_p5 = por %p1563_p9, %p1562_p7 }
 0x29b   : > { %p1560_p12 = pneg %p1559_p3 }
 0x29d   : > { %p1565_p8 = pnand %p1564_p5, %p1560_p12 }
 0x2ed   : > { %v695_v42 = vpop.xlane.xlu1 %694 }
 0x2ee   : > { %1349 = vrcp.f32 %v695_v42 }
 0x2f4   : > { %v1350_v44 = vpop.eup %1349 }
 0x2f5   : > { %v697_v45 = vmul.f32 %v1350_v44, %v1348_v40 }
 0x2f7   : > { %v698_v46 = vpack.c.bf16 %v697_v45, %v697_v45  ;;  %v1341_v45 = vld [vmem:[%s1986_s10] ss:$0 sm:$0xff] }
 0x2f9   : > { %1185 = vmatmul.msk.bf16.vlgmr.msra.gmra.mxu3 %vm686_vm4, %v698_v46 }
 0x305   : > { %v726_v47 = vpop.permute.xlu1 %725 }
 0x306   : > { %v731_v48 = vsel %vm623_vm0, %v726_v47, 0  ;;  %v1342_v47 = vld [vmem:[%s1987_s11] ss:$0 sm:$0xff] }
 0x307   : > { %740 = vmatpush.bf16.xpose.msrb.mxu3 %v731_v48 }
 0x30e   : > { %1186 = vmatmul.msk.bf16.vlgmr.msrb.gmra.mxu3 %vm623_vm0, %v724_v49 }
 0x37c   : > { %v714_v51 = vpop.f32.mrf.mxu3 }
 0x37d   : > { %v718_v52 = vpack.c.bf16 %v714_v51, %v714_v51 }
 0x37f   : > { %1205 = vmatmul.msk.bf16.vlgmr.msrb.gmra.mxu2 %vm623_vm0, %v718_v52  ;;  %v1239_v52 = vld [vmem:[#allocation13 + $0x8] sm:$0xff] }
 0x384   : > { %v716_v53 = vpop.f32.mrf.mxu3 }
 0x385   : > { %v1238_v53 = vld [vmem:[#allocation13] sm:$0xff] }
 0x391   : > { %v742_v54 = vpop.f32.mrf.mxu3 }
 0x392   : > { %v743_v55 = vadd.f32 %v742_v54, %v659_v32  ;;  %v1343_v54 = vld [vmem:[%s1983_s7] ss:$0 sm:$0xff] }
 0x394   : > { %v746_v56 = vsel %vm686_vm4, %v743_v55, -inf }
 0x395   : > { %747 = vmax.xlane.f32.xlu2 %v746_v56 }
 0x399   : > { %v744_v57 = vpop.f32.mrf.mxu3 }
 0x3ad   : > { %761 = vrot.lane.b32.xlu2 %v760_v59, %s1633_s19 }
 0x402   : > { %v840_v60 = vpop.f32.mrf.mxu2 }
 0x408   : > { %v748_v61 = vpop.xlane.xlu2 %747 }
 0x409   : > { %v749_v62 = vsub.f32 %v743_v55, %v748_v61 }
 0x40a   : > { %v842_v63 = vpop.f32.mrf.mxu2 }
 0x40b   : > { %v750_v0 = vmul.f32 1.442695, %v749_v62 }
 0x40d   : > { %1351 = vpow2.f32 %v750_v0 }
 0x410   : > { %v762_v1 = vpop.permute.xlu2 %761 }
 0x411   : > { %v767_v2 = vsel %vm654_vm1, %v762_v1, 0 }
 0x412   : > { %776 = vmatpush.bf16.msrb.mxu0 %v767_v2 }
 0x413   : > { %v1352_v3 = vpop.eup %1351 }
 0x414   : > { %v752_v4 = vsel %vm686_vm4, %v1352_v3, 0.0 }
 0x415   : > { %753 = vadd.xlane.f32.xlu1 %v752_v4 }
 0x416   : > { %959 = vmatpush.bf16.msra.mxu0 %v1239_v52 }
 0x41a   : > { %960 = vmatpush.bf16.msra.mxu0 %v1238_v53 }
 0x488   : > { %v754_v6 = vpop.xlane.xlu1 %753 }
 0x489   : > { %1353 = vrcp.f32 %v754_v6 }
 0x48a   : > { %1355 = vrcp.f32 %v1636_v23 }
 0x48f   : > { %v1354_v7 = vpop.eup %1353 }
 0x490   : > { %v756_v8 = vmul.f32 %v1354_v7, %v1352_v3  ;;  %v1356_v24 = vpop.eup %1355 }
 0x491   : > { %v858_v25 = vmul.f32 32.0, %v1356_v24  ;;  %vm862_vm5 = vweird.f32 %v1356_v24 }
 0x492   : > { %v757_v9 = vpack.c.bf16 %v756_v8, %v756_v8 }
 0x493   : > { %v859_v26 = vsub.f32 1.0, %v858_v25 }
 0x494   : > { %1187 = vmatmul.msk.bf16.vlgmr.msrb.gmra.mxu0 %vm686_vm4, %v757_v9 }
 0x495   : > { %v860_v27 = vmul.f32 %v1356_v24, %v859_v26 }
 0x497   : > { %v861_v28 = vadd.f32 %v1356_v24, %v860_v27 }
 0x499   : > { %v863_v29 = vsel %vm862_vm5, %v1356_v24, %v861_v28 }
 0x511   : > { %v778_v12 = vpop.f32.mrf.mxu0 }
 0x512   : > { %v782_v13 = vpack.c.bf16 %v778_v12, %v778_v12 }
 0x514   : > { %1196 = vmatmul.msk.bf16.vlgmr.msrb.gmra.mxu1 %vm623_vm0, %v782_v13 }
 0x519   : > { %v780_v14 = vpop.f32.mrf.mxu0 }
 0x591   : > { %v812_v15 = vpop.f32.mrf.mxu1 }
 0x592   : > { %v841_v16 = vadd.f32 %v840_v60, %v812_v15  ;;  %v1344_v60 = vld [vmem:[%s1985_s9] ss:$0 sm:$0xff] }
 0x594   : > { %844 = vst.msk [vmem:[#allocation3] sm:$0xff] %vm623_vm0, %v841_v16 }
 0x599   : > { %v814_v18 = vpop.f32.mrf.mxu1 }
 0x59b   : > { %v845_v19 = vld [vmem:[#allocation3] sm:$0xff] }
 0x59c   : > { %v850_v20 = vadd.f32 %v1340_v17, %v845_v19  ;;  %v1345_v17 = vld [vmem:[%s2023_s27] ss:$0 sm:$0xff] }
 0x59e   : > { %v851_v21 = vadd.f32 %v850_v20, %v1884_v11  ;;  %v1237_v11 = vld [vmem:[#allocation12 + $0x8] sm:$0xff]  ;;  %v1346_v20 = vld [vmem:[%s2026_s8] ss:$0 sm:$0xff] }
 0x59f   : > { %921 = vmatpush.bf16.msra.mxu3 %v1237_v11 }
 0x5a0   : > { %v854_v22 = vsel %vm623_vm0, %v851_v21, 0.0 }
 0x5a1   : > { %855 = vadd.xlane.f32.xlu0 %v854_v22 }
 0x5a3   : > { %922 = vmatpush.bf16.msra.mxu3 %v1236_v35 }
 0x614   : > { %v856_v30 = vpop.xlane.xlu0 %855 }
 0x615   : > { %v864_v31 = vmul.f32 %v863_v29, %v856_v30 }
 0x617   : > { %v865_v32 = vsub.f32 %v851_v21, %v864_v31 }
 0x619   : > { %v866_v33 = vmul.f32 %v865_v32, %v865_v32 }
 0x61b   : > { %v867_v34 = vsel %vm623_vm0, %v866_v33, 0.0 }
 0x61c   : > { %868 = vadd.xlane.f32.xlu0 %v867_v34 }
 0x68f   : > { %v869_v36 = vpop.xlane.xlu0 %868 }
 0x690   : > { %v870_v37 = vmul.f32 %v869_v36, %v863_v29 }
 0x692   : > { %v871_v38 = vadd.f32 1e-05, %v870_v37 }
 0x694   : > { %1357 = vrsqrt.f32 %v871_v38  ;;  %vm878_vm7 = vweird.f32 %v871_v38 }
 0x69a   : > { %v1358_v39 = vpop.eup %1357 }
 0x69b   : > { %v873_v40 = vmul.f32 %v1358_v39, %v871_v38  ;;  %vm879_vm6 = vweird.f32 %v1358_v39 }
 0x69c   : > { %vm880_vm8 = vmor %vm878_vm7, %vm879_vm6 }
 0x69d   : > { %v874_v41 = vmul.f32 %v1358_v39, %v873_v40 }
 0x69f   : > { %v875_v42 = vmul.f32 0.5, %v874_v41 }
 0x6a1   : > { %v876_v43 = vsub.f32 1.5, %v875_v42 }
 0x6a3   : > { %v877_v44 = vmul.f32 %v1358_v39, %v876_v43 }
 0x6a5   : > { %v881_v46 = vsel %vm880_vm8, %v1358_v39, %v877_v44 }
 0x6a6   : > { %v882_v48 = vmul.f32 %v881_v46, %v865_v32 }
 0x6a8   : > { %v886_v49 = vmul.f32 %v1341_v45, %v882_v48 }
 0x6aa   : > { %v890_v50 = vadd.f32 %v1342_v47, %v886_v49 }
 0x6ac   : > { %v891_v51 = vpack.c.bf16 %v890_v50, %v890_v50 }
 0x6ae   : > { %1214 = vmatmul.msk.bf16.vlgmr.msra.gmra.mxu3 %vm623_vm0, %v891_v51 }
 0x731   : > { %v924_v55 = vpop.f32.mrf.mxu3 }
 0x732   : > { %v925_v56 = vadd.f32 %v1343_v54, %v924_v55 }
 0x734   : > { %v928_v57 = vmax.f32 %v925_v56, 0.0 }
 0x736   : > { %v929_v58 = vpack.c.bf16 %v928_v57, %v928_v57 }
 0x738   : > { %1223 = vmatmul.msk.bf16.vlgmr.msra.gmra.mxu0 %vm623_vm0, %v929_v58 }
 0x739   : > { %v926_v59 = vpop.f32.mrf.mxu3 }
 0x7b5   : > { %v962_v61 = vpop.f32.mrf.mxu0 }
 0x7b6   : > { %v963_v62 = vadd.f32 %v1344_v60, %v962_v61 }
 0x7b8   : > { %v966_v63 = vadd.f32 %v963_v62, %v890_v50 }
 0x7ba   : > { %v969_v0 = vsel %vm623_vm0, %v966_v63, 0.0 }
 0x7bb   : > { %970 = vadd.xlane.f32.xlu0 %v969_v0 }
 0x7bd   : > { %v964_v1 = vpop.f32.mrf.mxu0 }
 0x82e   : > { %v971_v2 = vpop.xlane.xlu0 %970 }
 0x82f   : > { %v972_v3 = vmul.f32 %v971_v2, %v863_v29 }
 0x831   : > { %v973_v4 = vsub.f32 %v966_v63, %v972_v3 }
 0x833   : > { %v974_v5 = vmul.f32 %v973_v4, %v973_v4 }
 0x835   : > { %v975_v6 = vsel %vm623_vm0, %v974_v5, 0.0 }
 0x836   : > { %976 = vadd.xlane.f32.xlu2 %v975_v6 }
 0x8a9   : > { %v977_v7 = vpop.xlane.xlu2 %976 }
 0x8aa   : > { %v978_v8 = vmul.f32 %v977_v7, %v863_v29 }
 0x8ac   : > { %v979_v9 = vadd.f32 1e-05, %v978_v8 }
 0x8ae   : > { %1359 = vrsqrt.f32 %v979_v9  ;;  %vm986_vm10 = vweird.f32 %v979_v9 }
 0x8b4   : > { %v1360_v10 = vpop.eup %1359 }
 0x8b5   : > { %v981_v12 = vmul.f32 %v1360_v10, %v979_v9  ;;  %vm987_vm9 = vweird.f32 %v1360_v10 }
 0x8b6   : > { %vm988_vm11 = vmor %vm986_vm10, %vm987_vm9 }
 0x8b7   : > { %v982_v13 = vmul.f32 %v1360_v10, %v981_v12 }
 0x8b9   : > { %v983_v14 = vmul.f32 0.5, %v982_v13 }
 0x8bb   : > { %v984_v15 = vsub.f32 1.5, %v983_v14 }
 0x8bd   : > { %v985_v16 = vmul.f32 %v1360_v10, %v984_v15 }
 0x8bf   : > { %v989_v18 = vsel %vm988_vm11, %v1360_v10, %v985_v16 }
 0x8c0   : > { %v990_v19 = vmul.f32 %v989_v18, %v973_v4 }
 0x8c2   : > { %v994_v21 = vmul.f32 %v1345_v17, %v990_v19 }
 0x8c4   : > { %v998_v22 = vadd.f32 %v1346_v20, %v994_v21 }
 0x8c6   : > { %999 = vst.msk [vmem:[%s589_s20] sm:$0xff] %vm623_vm0, %v998_v22 }
 0x8c7   : > { %1568 = shalt.err (!%p1565_p8)
}
 0x8c8   : > { %1260 = dma.vmem_to_hbm [thread:$0]  (%p1801_p4), %s1014_s18, 128, %s1016_s4, %s1001_s28  }
 0x8c9 PF: > { %s2027_s14 = sld [smem:[#allocation22_spill]]  ;;  %p2029_p10 = scmp.ge.s32.totalorder %s1623_s16, 2 }
 0x8cb   : > { %p1283_p13 = pnand %p2029_p10, %p1805_p6 }
 0x8cd   : > { %p1284_p11 = pneg %p1283_p13 }
 0x8cf   : > { %s1027_s23 = sand.u32 1, %s2027_s14  }
 0x8d0   : > { %s1028_s19 = scalar_lea.sflag [#allocation6], %s1027_s23 }
 0x8d1   : > { %1606 = dma.done.wait (%p1284_p11), %s1028_s19, 128  }
 0x8d2   : > { %1608 = vsyncadd (%p1284_p11), %s1028_s19, 4294967168  ;;  %s2030_s16 = sld [smem:[#allocation24_spill]]  ;;  %s2033_s29 = smov %s1615_s30 }
 0x8d3   : > { %s2031_s2 = sld [smem:[#allocation23_spill]] }
 0x8d4   : > { %s2032_s15 = sld [smem:[#allocation25_spill]] }
 0x8d8   : > { %p32_p0 = scmp.ge.s32.totalorder %s2030_s16, 4  }
 0x8d9   : > { %s2034_s30 = smov %s2031_s2 }
 0x8da   :  { %34 = sbr.rel (!%p32_p0) target bundleno = 17 (0x11), region = 151 }
 0x8df   :  { %1034 = vsyncpa [#allocation5], 1 }
 0x8e0   :  { %1036 = vsyncpa [#allocation5 + $0x1], 1 }
 0x8e1   :  { %1037 = vsyncpa [#allocation8], 1 }
 0x8e2   :  { %1039 = vsyncpa [#allocation8 + $0x1], 1 }
 0x8e3   :  { %1040 = vsyncpa [#allocation11], 1 }
 0x8e4   :  { %1041 = vsyncpa [#allocation14], 1 }
 0x8e5   :  { %1042 = vsyncpa [#allocation6], 1 }
 0x8e6   :  { %1044 = vsyncpa [#allocation6 + $0x1], 1 }

// kernel: tpu_custom_call.1
= control target key start
LH: loop header
LB: loop body
LE: loop exit
PB: predicated region body
PF: predicated region fallthrough
CT: control target
= control target key end

     0   :  { %s1976_s0 = inlined_call_operand.hbm [shape: f32[2,8,32], index: 0, kind: input, shape index: {}]   ;;  %s1977_s1 = inlined_call_operand.hbm [shape: bf16[2,8,8], index: 1, kind: input, shape index: {}]   ;;  %s1978_s2 = inlined_call_operand.hbm [shape: bf16[32,192], index: 2, kind: input, shape index: {}]   ;;  %s1979_s3 = inlined_call_operand.vmem [shape: f32[1,192], index: 3, kind: input, shape index: {}]   ;;  %s1980_s4 = inlined_call_operand.hbm [shape: bf16[2,32,32], index: 4, kind: input, shape index: {}]   ;;  %s1981_s5 = inlined_call_operand.vmem [shape: f32[1,32], index: 5, kind: input, shape index: {}]   ;;  %s1982_s6 = inlined_call_operand.hbm [shape: bf16[32,32], index: 6, kind: input, shape index: {}]   ;;  %s1983_s7 = inlined_call_operand.vmem [shape: f32[1,32], index: 7, kind: input, shape index: {}]   ;;  %s1984_s8 = inlined_call_operand.hbm [shape: bf16[32,32], index: 8, kind: input, shape index: {}]   ;;  %s1985_s9 = inlined_call_operand.vmem [shape: f32[1,32], index: 9, kind: input, shape index: {}]   ;;  %s1986_s10 = inlined_call_operand.vmem [shape: f32[1,32], index: 10, kind: input, shape index: {}]   ;;  %s1987_s11 = inlined_call_operand.vmem [shape: f32[1,32], index: 11, kind: input, shape index: {}]   ;;  %s1988_s12 = inlined_call_operand.vmem [shape: f32[1,32], index: 12, kind: input, shape index: {}]   ;;  %s1989_s13 = inlined_call_operand.vmem [shape: f32[1,32], index: 13, kind: input, shape index: {}]   ;;  %s1990_s14 = inlined_call_operand.hbm [shape: f32[2,8,32], index: 14, kind: output, shape index: {}]  }
   0x1   :  { %1999 = sst [smem:[#allocation28_spill]] %s1978_s2 }
   0x2   :  { %2000 = sst [smem:[#allocation29_spill]] %s1980_s4 }
   0x3   :  { %2001 = sst [smem:[#allocation30_spill]] %s1982_s6 }
   0x4   :  { %2002 = sst [smem:[#allocation31_spill]] %s1984_s8 }
   0x5   :  { %2003 = sst [smem:[#allocation32_spill]] %s1988_s12 }
   0x6   :  { %2004 = sst [smem:[#allocation33_spill]] %s1989_s13 }
   0x7   :  { %2005 = sst [smem:[#allocation34_spill]] %s1990_s14 }
   0x8   :  { %19 = vsyncpa [#allocation5], 0 }
   0x9   :  { %21 = vsyncpa [#allocation5 + $0x1], 0 }
   0xa   :  { %22 = vsyncpa [#allocation8], 0 }
   0xb   :  { %24 = vsyncpa [#allocation8 + $0x1], 0 }
   0xc   :  { %25 = vsyncpa [#allocation11], 0 }
   0xd   :  { %26 = vsyncpa [#allocation14], 0 }
   0xe   :  { %27 = vsyncpa [#allocation6], 0 }
   0xf   :  { %29 = vsyncpa [#allocation6 + $0x1], 0  ;;  %s1712_s29 = smov 0   ;;  %s1714_s30 = smov 0  }
  0x10   :  { %s1716_s15 = smov 0   ;;  %s1718_s16 = smov 0  }
  0x11 LB: > { %2006 = sst [smem:[#allocation22_spill]] %s1611_s29  ;;  %s1736_s20 = sadd.s32 4294967295, %s1623_s16   ;;  %s1623_s16 = sphi %s1718_s16, %s2030_s16   ;;  %s1619_s15 = sphi %s1716_s15, %s2032_s15   ;;  %s1615_s30 = sphi %s1714_s30, %s2034_s30   ;;  %s1611_s29 = sphi %s1712_s29, %s2033_s29  }
  0x12   : > { %2007 = sst [smem:[#allocation23_spill]] %s1619_s15  ;;  %p1148_p0 = scmp.ge.s32.totalorder %s1623_s16, 1 }
  0x13   : > { %s2008_s2 = sld [smem:[#allocation28_spill]]  ;;  %p56_p1 = scmp.eq.s32.totalorder %s1736_s20, 0 }
  0x14   : > { %p370_p2 = scmp.lt.s32.totalorder %s1623_s16, 3  ;;  %s1625_s22 = smov [#allocation9]  }
  0x15   : > { %s383_s23 = sshll.u32 %s1625_s22, 4  ;;  %s2010_s4 = sld [smem:[#allocation29_spill]]  ;;  %s384_s23 = int_to_ptr.vmem [resolvable:$true] %s383_s23 }
  0x16   : > { %p1741_p3 = pnand %p1148_p0, %p370_p2  ;;  %s1626_s28 = smov [#allocation10]  }
  0x17   : > { %s400_s17 = sshll.u32 %s1626_s28, 4  ;;  %s1627_s18 = smov 128   ;;  %s401_s17 = int_to_ptr.vmem [resolvable:$true] %s400_s17 }
  0x18   : > { %p1262_p4 = pneg %p1741_p3  ;;  %s1628_s22 = smov 8  }
  0x19   : > { %s381_s19 = sshll.u32 %s2008_s2, 4  ;;  %s1629_s24 = smov 64   ;;  %s382_s19 = int_to_ptr.hbm [resolvable:$true] %s381_s19 }
  0x1a   : > { %p1753_p6 = pnand %p1262_p4, %p56_p1  ;;  %s1630_s25 = smov 4  }
  0x1b   : > { %s398_s26 = sshll.u32 %s2010_s4, 4  ;;  %s2012_s6 = sld [smem:[#allocation30_spill]]  ;;  %s399_s26 = int_to_ptr.hbm [resolvable:$true] %s398_s26 }
  0x1c   : > { %1265 = dma.hbm_to_vmem [thread:$0]  (!%p1753_p6), %s382_s19, 512, %s384_s23, [#allocation8], %s1627_s18, %s1627_s18, %s1628_s22  }
  0x1d   : > { %1268 = dma.hbm_to_vmem [thread:$0]  (!%p1753_p6), %s399_s26, 512, %s401_s17, [#allocation11], %s1629_s24, %s1629_s24, %s1630_s25  }
  0x1e   : > { %s1631_s28 = smov [#allocation12]   ;;  %s2013_s8 = sld [smem:[#allocation31_spill]] }
  0x1f   : > { %s417_s19 = sshll.u32 %s1631_s28, 4  ;;  %s1632_s2 = smov [#allocation13]   ;;  %s418_s19 = int_to_ptr.vmem [resolvable:$true] %s417_s19 }
  0x20   : > { %s434_s4 = sshll.u32 %s1632_s2, 4  ;;  %s1147_s26 = sadd.s32 4294967294, %s1623_s16   ;;  %s435_s4 = int_to_ptr.vmem [resolvable:$true] %s434_s4 }
  0x21   : > { %s415_s13 = sshll.u32 %s2012_s6, 4  ;;  %s1773_s17 = sadd.s32 1, %s1623_s16   ;;  %s416_s13 = int_to_ptr.hbm [resolvable:$true] %s415_s13 }
  0x22   : > { %1271 = dma.hbm_to_vmem [thread:$0]  (!%p1753_p6), %s416_s13, 256, %s418_s19, [#allocation11], %s1629_s24, %s1629_s24, %s1630_s25  }
  0x23   : > { %2014 = sst [smem:[#allocation24_spill]] %s1773_s17  ;;  %s39_s28 = ssub.s32 %s1623_s16, %s1773_s17 }
  0x24   : > { %s432_s22 = sshll.u32 %s2013_s8, 4  ;;  %s42_s23 = sadd.s32 1, %s1619_s15  ;;  %s433_s22 = int_to_ptr.hbm [resolvable:$true] %s432_s22 }
  0x25   : > { %1274 = dma.hbm_to_vmem [thread:$0]  (!%p1753_p6), %s433_s22, 256, %s435_s4, [#allocation14], %s1629_s24, %s1629_s24, %s1630_s25  }
  0x26   : > { %p40_p7 = scmp.eq.s32.totalorder %s39_s28, 0  ;;  %p49_p8 = scmp.ne.s32.totalorder %s1619_s15, %s1615_s30 }
  0x27   : > { %p50_p9 = scmp.eq.s32.totalorder %s1623_s16, 0  ;;  %p55_p10 = scmp.ne.s32.totalorder %s1615_s30, %s1611_s29 }
  0x28   : > { %s1784_s13 = scalar_select %p40_p7, %s1619_s15, %s42_s23  }
  0x29   : > { %p1786_p11 = por %p50_p9, %p49_p8  ;;  %p1792_p12 = por %p56_p1, %p55_p10 }
  0x2a   : > { %2015 = sst [smem:[#allocation25_spill]] %s1784_s13  ;;  %p357_p13 = scmp.eq.s32.totalorder %s1736_s20, 1 }
  0x2b   : > { %p363_p0 = scmp.eq.s32.totalorder %s1147_s26, 1  ;;  %p1290_p2 = scmp.lt.s32.totalorder %s1623_s16, 2 }
  0x2c   : > { %s1799_s24 = sand.u32 1, %s1619_s15   ;;  %p1801_p4 = por %p357_p13, %p49_p8 }
  0x2d   : > { %p1805_p6 = por %p363_p0, %p55_p10  ;;  %s1154_s22 = sshll.u32 %s1799_s24, 3 }
  0x2e   : > { %s2018_s25 = scalar_select %p1801_p4, 1, 0 }
  0x2f   : > { %s2020_s18 = scalar_select %p1805_p6, 1, 0 }
  0x30   : > { %2019 = sst [smem:[#allocation26_spill]] %s2018_s25  ;;  %s1155_s2 = sshll.u32 %s1623_s16, 3 }
  0x31   : > { %2021 = sst [smem:[#allocation27_spill]] %s2020_s18  ;;  %s471_s26 = scalar_lea.hbm %s1976_s0, %s1155_s2 }
  0x32   : > { %s467_s23 = scalar_lea.vmem [#allocation4], %s1154_s22  ;;  %s473_s8 = sshll.u32 %s471_s26, 4  ;;  %s474_s8 = int_to_ptr.hbm [resolvable:$true] %s473_s8 }
  0x33   : > { %s475_s6 = sshll.u32 %s467_s23, 4  ;;  %p1816_p7 = pnand %p1290_p2, %p1786_p11  ;;  %s476_s6 = int_to_ptr.vmem [resolvable:$true] %s475_s6 }
  0x34   : > { %s482_s15 = sand.u32 1, %s1623_s16   ;;  %s1156_s17 = sshll.u32 %s1799_s24, 2 }
  0x35   : > { %s464_s18 = scalar_lea.sflag [#allocation5], %s1799_s24  ;;  %s1481_s29 = sshra.s32 %s474_s8, 4  ;;  %s1482_s29 = int_to_ptr.hbm [resolvable:$true] %s1481_s29 }
  0x36   : > { %s1483_s25 = scalar_lea.hbm %s1482_s29, 8  ;;  %p1485_p9 = pneg %p1816_p7 }
  0x37   : > { %p1484_p8 = scmp.ne.s32.totalorder %s1482_s29, %s1483_s25  ;;  %s1488_s2 = scalar_lea.hbm %s1976_s0, 16 }
  0x38   : > { %p1489_p11 = scmp.lt.s32.totalorder %s1482_s29, %s1976_s0  ;;  %p1490_p0 = scmp.lt.s32.totalorder %s1488_s2, %s1483_s25 }
  0x39   : > { %p1486_p10 = pnand %p1485_p9, %p1484_p8 }
  0x3a   : > { %p1491_p2 = por %p1490_p0, %p1489_p11 }
  0x3b   : > { %p1487_p13 = pneg %p1486_p10 }
  0x3d   : > { %p1492_p5 = pnand %p1491_p2, %p1487_p13 }
  0x3f   : > { %1495 = shalt.err (!%p1492_p5)
}
  0x40   : > { %1278 = dma.hbm_to_vmem [thread:$0]  (!%p1816_p7), %s474_s8, 128, %s476_s6, %s464_s18  }
  0x41   : > { %s1157_s24 = sshll.u32 %s1623_s16, 2  ;;  %s486_s19 = scalar_lea.vmem [#allocation7], %s1156_s17 }
  0x42   : > { %s490_s14 = scalar_lea.hbm %s1977_s1, %s1157_s24  ;;  %s494_s22 = sshll.u32 %s486_s19, 4  ;;  %s495_s22 = int_to_ptr.vmem [resolvable:$true] %s494_s22 }
  0x43   : > { %s492_s12 = sshll.u32 %s490_s14, 4  ;;  %s483_s29 = scalar_lea.sflag [#allocation8], %s482_s15  ;;  %s493_s12 = int_to_ptr.hbm [resolvable:$true] %s492_s12 }
  0x44   : > { %s1511_s25 = sshra.s32 %s493_s12, 4  ;;  %s1518_s18 = scalar_lea.hbm %s1977_s1, 8  ;;  %s1512_s25 = int_to_ptr.hbm [resolvable:$true] %s1511_s25 }
  0x45   : > { %s1513_s2 = scalar_lea.hbm %s1512_s25, 4  ;;  %p1519_p13 = scmp.lt.s32.totalorder %s1512_s25, %s1977_s1 }
  0x46   : > { %p1514_p5 = scmp.ne.s32.totalorder %s1512_s25, %s1513_s2  ;;  %p1520_p11 = scmp.lt.s32.totalorder %s1518_s18, %s1513_s2 }
  0x48   : > { %p1516_p8 = pnand %p1514_p5, %p1485_p9  ;;  %p1521_p0 = por %p1520_p11, %p1519_p13 }
  0x4a   : > { %p1517_p10 = pneg %p1516_p8 }
  0x4c   : > { %p1522_p2 = pnand %p1521_p0, %p1517_p10 }
  0x4e   : > { %1525 = shalt.err (!%p1522_p2)
}
  0x4f   : > { %1281 = dma.hbm_to_vmem [thread:$0]  (!%p1816_p7), %s493_s12, 64, %s495_s22, %s483_s29  }
  0x50   : > { %503 = sbr.rel (%p1741_p3) target bundleno = 2249 (0x8c9), region = 76  ;;  %s1854_s14 = sand.u32 (!%p1741_p3), 1, %s1615_s30  }
  0x51   : > { %s1159_s15 = sshll.u32 (!%p1741_p3), %s1854_s14, 3  ;;  %s506_s17 = scalar_lea.sflag (!%p1741_p3), [#allocation5], %s1854_s14 }
  0x52   : > { %s509_s24 = scalar_lea.vmem (!%p1741_p3), [#allocation4], %s1159_s15 }
  0x55   : > { %1586 = dma.done.wait (%p1792_p12), %s506_s17, 128  }
  0x56   : > { %1588 = vsyncadd (%p1792_p12), %s506_s17, 4294967168  ;;  %s515_s12 = sand.u32 1, %s1736_s20   ;;  %s1160_s21 = sshll.u32 %s1854_s14, 2 }
  0x57   : > { %s516_s13 = scalar_lea.sflag [#allocation8], %s515_s12  ;;  %s1866_s26 = scalar_lea.vmem [#allocation7], %s1160_s21 }
  0x58   : > { %1590 = dma.done.wait (%p1792_p12), %s516_s13, 64  }
  0x59   : > { %1592 = vsyncadd (%p1792_p12), %s516_s13, 4294967232 }
  0x5a   : > { %1594 = dma.done.wait (%p56_p1), [#allocation8], 512  }
  0x5b   : > { %1596 = vsyncadd (%p56_p1), [#allocation8], 4294966784 }
  0x5c   : > { %1598 = dma.done.wait (%p56_p1), [#allocation11], 768  }
  0x5d   : > { %1600 = vsyncadd (%p56_p1), [#allocation11], 4294966528 }
  0x5e   : > { %1602 = dma.done.wait (%p56_p1), [#allocation14], 256  }
  0x5f   : > { %1604 = vsyncadd (%p56_p1), [#allocation14], 4294967040  ;;  %v1176_v0 = vld [vmem:[#allocation9 + $0x10] sm:$0xf]  ;;  %v1231_v1 = vld [vmem:[#allocation9 + $0x14] sm:$0xf0] }
  0x60   : > { %v1230_v2 = vld [vmem:[#allocation9 + $0x14] sm:$0xf]  ;;  %v1177_v3 = vor.u32 %v1231_v1, %v1176_v0  ;;  %v1178_v4 = vld [vmem:[#allocation9 + $0x18] sm:$0xf0]  ;;  %v1168_v5 = vld [vmem:[#allocation9] sm:$0xf] }
  0x61   : > { %v1229_v6 = vld [vmem:[#allocation9 + $0x4] sm:$0xf0]  ;;  %v1181_v7 = vor.u32 %v1230_v2, %v1178_v4  ;;  %v1228_v8 = vld [vmem:[#allocation9 + $0x4] sm:$0xf]  ;;  %v1170_v9 = vld [vmem:[#allocation9 + $0x8] sm:$0xf0] }
  0x62   : > { %633 = vmatpush.bf16.msra.mxu0 %v1177_v3  ;;  %v1169_v10 = vor.u32 %v1229_v6, %v1168_v5  ;;  %v1884_v11 = vld [vmem:[%s509_s24] sm:$0xff]  ;;  %v1173_v12 = vor.u32 %v1228_v8, %v1170_v9  ;;  %vm623_vm0 = vcmask 261120   ;;  %v597_v14 = vld [vmem:[%s1979_s3] sm:$0x3]  ;;  %vm654_vm1 = vcmask 1043456   ;;  %s1633_s19 = smov 96  }
  0x63   : > { %646 = vmatpush.bf16.msra.mxu1 %v1181_v7  ;;  %v592_v13 = vpack.c.bf16 %v1884_v11, %v1884_v11  ;;  %v599_v15 = vperm.slane %v597_v14, 0  ;;  %v600_v16 = vperm.slane %v597_v14, 1  ;;  %vm655_vm2 = vcmask 523268   ;;  %s1634_s22 = smov 64   ;;  %v658_v31 = vld [vmem:[%s1866_s26] sm:$0xf] }
  0x64   : > { %vm656_vm3 = vmor %vm655_vm2, %vm654_vm1  ;;  %v659_v32 = vunpack.c.l.bf16 %v658_v31  ;;  %vm686_vm4 = vcmask 64512   ;;  %s1635_s29 = smov 32   ;;  %v1233_v43 = vld [vmem:[#allocation10 + $0x8] sm:$0xff]  ;;  %v1232_v50 = vld [vmem:[#allocation10] sm:$0xff]  ;;  %s1225_s21 = sshll.u32 %s1736_s20, 3 }
  0x65   : > { %v1235_v5 = vld [vmem:[#allocation10 + $0x18] sm:$0xff]  ;;  %s2023_s27 = sld [smem:[#allocation32_spill]]  ;;  %s589_s20 = scalar_lea.vmem [#allocation15], %s1159_s15 }
  0x66   : > { %634 = vmatpush.bf16.msra.mxu0 %v1169_v10  ;;  %v1234_v10 = vld [vmem:[#allocation10 + $0x10] sm:$0xff]  ;;  %s2026_s8 = sld [smem:[#allocation33_spill]]  ;;  %s1013_s18 = sshll.u32 %s589_s20, 4  ;;  %s1014_s18 = int_to_ptr.vmem [resolvable:$true] %s1013_s18 }
  0x67   : > { %647 = vmatpush.bf16.msra.mxu1 %v1173_v12  ;;  %s1001_s28 = scalar_lea.sflag [#allocation6], %s1854_s14 }
  0x69   : > { %1182 = vmatmul.msk.bf16.vlgmr.msra.gmra.mxu0 %vm623_vm0, %v592_v13 }
  0x6a   : > { %1183 = vmatmul.msk.bf16.vlgmr.msra.gmra.mxu1 %vm623_vm0, %v592_v13 }
  0x6b   : > { %809 = vmatpush.bf16.msrb.mxu1 %v1235_v5 }
  0x6f   : > { %810 = vmatpush.bf16.msrb.mxu1 %v1234_v10 }
  0xe6   : > { %v636_v17 = vpop.f32.mrf.mxu0 }
  0xe7   : > { %v637_v18 = vadd.f32 %v636_v17, %v599_v15  ;;  %v649_v19 = vpop.f32.mrf.mxu1  ;;  %v1340_v17 = vld [vmem:[%s1981_s5] ss:$0 sm:$0xff] }
  0xe8   : > { %v650_v20 = vadd.f32 %v649_v19, %v600_v16 }
  0xea   : > { %v653_v21 = vpack.c.bf16 %v650_v20, %v637_v18 }
  0xec   : > { %657 = vst.msk [vmem:[#allocation2] sm:$0xff] %vm656_vm3, %v653_v21 }
  0xee   : > { %v638_v22 = vpop.f32.mrf.mxu0 }
  0xef   : > { %v651_v23 = vpop.f32.mrf.mxu1 }
  0xf0   : > { %v1636_v23 = vmov 32.0  }
  0xf3   : > { %v661_v24 = vld [vmem:[#allocation2 + $0x4] sm:$0xf]  ;;  %v660_v25 = vld [vmem:[#allocation2] sm:$0xf] }
  0xf4   : > { %v703_v26 = vsel %vm654_vm1, %v661_v24, 0  ;;  %v663_v27 = vunpack.c.l.b16 %v660_v25  ;;  %v759_v58 = vunpack.c.l.b16 %v661_v24 }
  0xf5   : > { %712 = vmatpush.bf16.msra.mxu3 %v703_v26 }
  0xf6   : > { %v664_v28 = vpack.c.b16 %v663_v27, %v663_v27  ;;  %v760_v59 = vpack.c.b16 %v759_v58, %v759_v58 }
  0xf8   : > { %723 = vrot.lane.b32.xlu2 %v664_v28, %s1633_s19  ;;  %665 = vrot.lane.b32.xlu0 %v664_v28, %s1634_s22  ;;  %s2024_s22 = sld [smem:[#allocation34_spill]] }
  0xfe   : > { %s1561_s15 = scalar_lea.hbm %s2024_s22, 16 }
 0x152   : > { %v724_v49 = vpop.permute.xlu2 %723 }
 0x16a   : > { %v666_v29 = vpop.permute.xlu0 %665 }
 0x16b   : > { %v671_v30 = vsel %vm623_vm0, %v666_v29, 0 }
 0x16c   : > { %680 = vmatpush.bf16.xpose.msra.mxu2 %v671_v30 }
 0x173   : > { %1184 = vmatmul.msk.bf16.vlgmr.msra.gmra.mxu2 %vm623_vm0, %v660_v25 }
 0x174   : > { %837 = vmatpush.bf16.msrb.mxu2 %v1233_v43 }
 0x178   : > { %838 = vmatpush.bf16.msrb.mxu2 %v1232_v50 }
 0x1f6   : > { %v682_v33 = vpop.f32.mrf.mxu2 }
 0x1f7   : > { %v683_v34 = vadd.f32 %v682_v33, %v659_v32 }
 0x1f9   : > { %v687_v35 = vsel %vm686_vm4, %v683_v34, -inf }
 0x1fa   : > { %688 = vmax.xlane.f32.xlu0 %v687_v35  ;;  %v1236_v35 = vld [vmem:[#allocation12] sm:$0xff] }
 0x1fe   : > { %v684_v36 = vpop.f32.mrf.mxu2 }
 0x26d   : > { %v689_v37 = vpop.xlane.xlu0 %688 }
 0x26e   : > { %v690_v38 = vsub.f32 %v683_v34, %v689_v37 }
 0x270   : > { %v691_v39 = vmul.f32 1.442695, %v690_v38 }
 0x272   : > { %1347 = vpow2.f32 %v691_v39 }
 0x278   : > { %v1348_v40 = vpop.eup %1347 }
 0x279   : > { %v693_v41 = vsel %vm686_vm4, %v1348_v40, 0.0 }
 0x27a   : > { %694 = vadd.xlane.f32.xlu1 %v693_v41 }
 0x293   : > { %725 = vrot.lane.b32.xlu1 %v664_v28, %s1635_s29  ;;  %s1011_s29 = scalar_lea.hbm %s2024_s22, %s1225_s21 }
 0x294   : > { %s1015_s4 = sshll.u32 %s1011_s29, 4  ;;  %s1016_s4 = int_to_ptr.hbm [resolvable:$true] %s1015_s4 }
 0x295   : > { %s1555_s17 = sshra.s32 %s1016_s4, 4  ;;  %s1556_s17 = int_to_ptr.hbm [resolvable:$true] %s1555_s17 }
 0x296   : > { %s1557_s24 = scalar_lea.hbm %s1556_s17, 8  ;;  %p1562_p7 = scmp.lt.s32.totalorder %s1556_s17, %s2024_s22 }
 0x297   : > { %p1558_p1 = scmp.ne.s32.totalorder %s1556_s17, %s1557_s24  ;;  %p1563_p9 = scmp.lt.s32.totalorder %s1561_s15, %s1557_s24 }
 0x299   : > { %p1559_p3 = pnand %p1558_p1, %p1801_p4  ;;  %p1564_p5 = por %p1563_p9, %p1562_p7 }
 0x29b   : > { %p1560_p12 = pneg %p1559_p3 }
 0x29d   : > { %p1565_p8 = pnand %p1564_p5, %p1560_p12 }
 0x2ed   : > { %v695_v42 = vpop.xlane.xlu1 %694 }
 0x2ee   : > { %1349 = vrcp.f32 %v695_v42 }
 0x2f4   : > { %v1350_v44 = vpop.eup %1349 }
 0x2f5   : > { %v697_v45 = vmul.f32 %v1350_v44, %v1348_v40 }
 0x2f7   : > { %v698_v46 = vpack.c.bf16 %v697_v45, %v697_v45  ;;  %v1341_v45 = vld [vmem:[%s1986_s10] ss:$0 sm:$0xff] }
 0x2f9   : > { %1185 = vmatmul.msk.bf16.vlgmr.msra.gmra.mxu3 %vm686_vm4, %v698_v46 }
 0x305   : > { %v726_v47 = vpop.permute.xlu1 %725 }
 0x306   : > { %v731_v48 = vsel %vm623_vm0, %v726_v47, 0  ;;  %v1342_v47 = vld [vmem:[%s1987_s11] ss:$0 sm:$0xff] }
 0x307   : > { %740 = vmatpush.bf16.xpose.msrb.mxu3 %v731_v48 }
 0x30e   : > { %1186 = vmatmul.msk.bf16.vlgmr.msrb.gmra.mxu3 %vm623_vm0, %v724_v49 }
 0x37c   : > { %v714_v51 = vpop.f32.mrf.mxu3 }
 0x37d   : > { %v718_v52 = vpack.c.bf16 %v714_v51, %v714_v51 }
 0x37f   : > { %1205 = vmatmul.msk.bf16.vlgmr.msrb.gmra.mxu2 %vm623_vm0, %v718_v52  ;;  %v1239_v52 = vld [vmem:[#allocation13 + $0x8] sm:$0xff] }
 0x384   : > { %v716_v53 = vpop.f32.mrf.mxu3 }
 0x385   : > { %v1238_v53 = vld [vmem:[#allocation13] sm:$0xff] }
 0x391   : > { %v742_v54 = vpop.f32.mrf.mxu3 }
 0x392   : > { %v743_v55 = vadd.f32 %v742_v54, %v659_v32  ;;  %v1343_v54 = vld [vmem:[%s1983_s7] ss:$0 sm:$0xff] }
 0x394   : > { %v746_v56 = vsel %vm686_vm4, %v743_v55, -inf }
 0x395   : > { %747 = vmax.xlane.f32.xlu2 %v746_v56 }
 0x399   : > { %v744_v57 = vpop.f32.mrf.mxu3 }
 0x3ad   : > { %761 = vrot.lane.b32.xlu2 %v760_v59, %s1633_s19 }
 0x402   : > { %v840_v60 = vpop.f32.mrf.mxu2 }
 0x408   : > { %v748_v61 = vpop.xlane.xlu2 %747 }
 0x409   : > { %v749_v62 = vsub.f32 %v743_v55, %v748_v61 }
 0x40a   : > { %v842_v63 = vpop.f32.mrf.mxu2 }
 0x40b   : > { %v750_v0 = vmul.f32 1.442695, %v749_v62 }
 0x40d   : > { %1351 = vpow2.f32 %v750_v0 }
 0x410   : > { %v762_v1 = vpop.permute.xlu2 %761 }
 0x411   : > { %v767_v2 = vsel %vm654_vm1, %v762_v1, 0 }
 0x412   : > { %776 = vmatpush.bf16.msrb.mxu0 %v767_v2 }
 0x413   : > { %v1352_v3 = vpop.eup %1351 }
 0x414   : > { %v752_v4 = vsel %vm686_vm4, %v1352_v3, 0.0 }
 0x415   : > { %753 = vadd.xlane.f32.xlu1 %v752_v4 }
 0x416   : > { %959 = vmatpush.bf16.msra.mxu0 %v1239_v52 }
 0x41a   : > { %960 = vmatpush.bf16.msra.mxu0 %v1238_v53 }
 0x488   : > { %v754_v6 = vpop.xlane.xlu1 %753 }
 0x489   : > { %1353 = vrcp.f32 %v754_v6 }
 0x48a   : > { %1355 = vrcp.f32 %v1636_v23 }
 0x48f   : > { %v1354_v7 = vpop.eup %1353 }
 0x490   : > { %v756_v8 = vmul.f32 %v1354_v7, %v1352_v3  ;;  %v1356_v24 = vpop.eup %1355 }
 0x491   : > { %v858_v25 = vmul.f32 32.0, %v1356_v24  ;;  %vm862_vm5 = vweird.f32 %v1356_v24 }
 0x492   : > { %v757_v9 = vpack.c.bf16 %v756_v8, %v756_v8 }
 0x493   : > { %v859_v26 = vsub.f32 1.0, %v858_v25 }
 0x494   : > { %1187 = vmatmul.msk.bf16.vlgmr.msrb.gmra.mxu0 %vm686_vm4, %v757_v9 }
 0x495   : > { %v860_v27 = vmul.f32 %v1356_v24, %v859_v26 }
 0x497   : > { %v861_v28 = vadd.f32 %v1356_v24, %v860_v27 }
 0x499   : > { %v863_v29 = vsel %vm862_vm5, %v1356_v24, %v861_v28 }
 0x511   : > { %v778_v12 = vpop.f32.mrf.mxu0 }
 0x512   : > { %v782_v13 = vpack.c.bf16 %v778_v12, %v778_v12 }
 0x514   : > { %1196 = vmatmul.msk.bf16.vlgmr.msrb.gmra.mxu1 %vm623_vm0, %v782_v13 }
 0x519   : > { %v780_v14 = vpop.f32.mrf.mxu0 }
 0x591   : > { %v812_v15 = vpop.f32.mrf.mxu1 }
 0x592   : > { %v841_v16 = vadd.f32 %v840_v60, %v812_v15  ;;  %v1344_v60 = vld [vmem:[%s1985_s9] ss:$0 sm:$0xff] }
 0x594   : > { %844 = vst.msk [vmem:[#allocation3] sm:$0xff] %vm623_vm0, %v841_v16 }
 0x599   : > { %v814_v18 = vpop.f32.mrf.mxu1 }
 0x59b   : > { %v845_v19 = vld [vmem:[#allocation3] sm:$0xff] }
 0x59c   : > { %v850_v20 = vadd.f32 %v1340_v17, %v845_v19  ;;  %v1345_v17 = vld [vmem:[%s2023_s27] ss:$0 sm:$0xff] }
 0x59e   : > { %v851_v21 = vadd.f32 %v850_v20, %v1884_v11  ;;  %v1237_v11 = vld [vmem:[#allocation12 + $0x8] sm:$0xff]  ;;  %v1346_v20 = vld [vmem:[%s2026_s8] ss:$0 sm:$0xff] }
 0x59f   : > { %921 = vmatpush.bf16.msra.mxu3 %v1237_v11 }
 0x5a0   : > { %v854_v22 = vsel %vm623_vm0, %v851_v21, 0.0 }
 0x5a1   : > { %855 = vadd.xlane.f32.xlu0 %v854_v22 }
 0x5a3   : > { %922 = vmatpush.bf16.msra.mxu3 %v1236_v35 }
 0x614   : > { %v856_v30 = vpop.xlane.xlu0 %855 }
 0x615   : > { %v864_v31 = vmul.f32 %v863_v29, %v856_v30 }
 0x617   : > { %v865_v32 = vsub.f32 %v851_v21, %v864_v31 }
 0x619   : > { %v866_v33 = vmul.f32 %v865_v32, %v865_v32 }
 0x61b   : > { %v867_v34 = vsel %vm623_vm0, %v866_v33, 0.0 }
 0x61c   : > { %868 = vadd.xlane.f32.xlu0 %v867_v34 }
 0x68f   : > { %v869_v36 = vpop.xlane.xlu0 %868 }
 0x690   : > { %v870_v37 = vmul.f32 %v869_v36, %v863_v29 }
 0x692   : > { %v871_v38 = vadd.f32 1e-05, %v870_v37 }
 0x694   : > { %1357 = vrsqrt.f32 %v871_v38  ;;  %vm878_vm7 = vweird.f32 %v871_v38 }
 0x69a   : > { %v1358_v39 = vpop.eup %1357 }
 0x69b   : > { %v873_v40 = vmul.f32 %v1358_v39, %v871_v38  ;;  %vm879_vm6 = vweird.f32 %v1358_v39 }
 0x69c   : > { %vm880_vm8 = vmor %vm878_vm7, %vm879_vm6 }
 0x69d   : > { %v874_v41 = vmul.f32 %v1358_v39, %v873_v40 }
 0x69f   : > { %v875_v42 = vmul.f32 0.5, %v874_v41 }
 0x6a1   : > { %v876_v43 = vsub.f32 1.5, %v875_v42 }
 0x6a3   : > { %v877_v44 = vmul.f32 %v1358_v39, %v876_v43 }
 0x6a5   : > { %v881_v46 = vsel %vm880_vm8, %v1358_v39, %v877_v44 }
 0x6a6   : > { %v882_v48 = vmul.f32 %v881_v46, %v865_v32 }
 0x6a8   : > { %v886_v49 = vmul.f32 %v1341_v45, %v882_v48 }
 0x6aa   : > { %v890_v50 = vadd.f32 %v1342_v47, %v886_v49 }
 0x6ac   : > { %v891_v51 = vpack.c.bf16 %v890_v50, %v890_v50 }
 0x6ae   : > { %1214 = vmatmul.msk.bf16.vlgmr.msra.gmra.mxu3 %vm623_vm0, %v891_v51 }
 0x731   : > { %v924_v55 = vpop.f32.mrf.mxu3 }
 0x732   : > { %v925_v56 = vadd.f32 %v1343_v54, %v924_v55 }
 0x734   : > { %v928_v57 = vmax.f32 %v925_v56, 0.0 }
 0x736   : > { %v929_v58 = vpack.c.bf16 %v928_v57, %v928_v57 }
 0x738   : > { %1223 = vmatmul.msk.bf16.vlgmr.msra.gmra.mxu0 %vm623_vm0, %v929_v58 }
 0x739   : > { %v926_v59 = vpop.f32.mrf.mxu3 }
 0x7b5   : > { %v962_v61 = vpop.f32.mrf.mxu0 }
 0x7b6   : > { %v963_v62 = vadd.f32 %v1344_v60, %v962_v61 }
 0x7b8   : > { %v966_v63 = vadd.f32 %v963_v62, %v890_v50 }
 0x7ba   : > { %v969_v0 = vsel %vm623_vm0, %v966_v63, 0.0 }
 0x7bb   : > { %970 = vadd.xlane.f32.xlu0 %v969_v0 }
 0x7bd   : > { %v964_v1 = vpop.f32.mrf.mxu0 }
 0x82e   : > { %v971_v2 = vpop.xlane.xlu0 %970 }
 0x82f   : > { %v972_v3 = vmul.f32 %v971_v2, %v863_v29 }
 0x831   : > { %v973_v4 = vsub.f32 %v966_v63, %v972_v3 }
 0x833   : > { %v974_v5 = vmul.f32 %v973_v4, %v973_v4 }
 0x835   : > { %v975_v6 = vsel %vm623_vm0, %v974_v5, 0.0 }
 0x836   : > { %976 = vadd.xlane.f32.xlu2 %v975_v6 }
 0x8a9   : > { %v977_v7 = vpop.xlane.xlu2 %976 }
 0x8aa   : > { %v978_v8 = vmul.f32 %v977_v7, %v863_v29 }
 0x8ac   : > { %v979_v9 = vadd.f32 1e-05, %v978_v8 }
 0x8ae   : > { %1359 = vrsqrt.f32 %v979_v9  ;;  %vm986_vm10 = vweird.f32 %v979_v9 }
 0x8b4   : > { %v1360_v10 = vpop.eup %1359 }
 0x8b5   : > { %v981_v12 = vmul.f32 %v1360_v10, %v979_v9  ;;  %vm987_vm9 = vweird.f32 %v1360_v10 }
 0x8b6   : > { %vm988_vm11 = vmor %vm986_vm10, %vm987_vm9 }
 0x8b7   : > { %v982_v13 = vmul.f32 %v1360_v10, %v981_v12 }
 0x8b9   : > { %v983_v14 = vmul.f32 0.5, %v982_v13 }
 0x8bb   : > { %v984_v15 = vsub.f32 1.5, %v983_v14 }
 0x8bd   : > { %v985_v16 = vmul.f32 %v1360_v10, %v984_v15 }
 0x8bf   : > { %v989_v18 = vsel %vm988_vm11, %v1360_v10, %v985_v16 }
 0x8c0   : > { %v990_v19 = vmul.f32 %v989_v18, %v973_v4 }
 0x8c2   : > { %v994_v21 = vmul.f32 %v1345_v17, %v990_v19 }
 0x8c4   : > { %v998_v22 = vadd.f32 %v1346_v20, %v994_v21 }
 0x8c6   : > { %999 = vst.msk [vmem:[%s589_s20] sm:$0xff] %vm623_vm0, %v998_v22 }
 0x8c7   : > { %1568 = shalt.err (!%p1565_p8)
}
 0x8c8   : > { %1260 = dma.vmem_to_hbm [thread:$0]  (%p1801_p4), %s1014_s18, 128, %s1016_s4, %s1001_s28  }
 0x8c9 PF: > { %s2027_s14 = sld [smem:[#allocation22_spill]]  ;;  %p2029_p10 = scmp.ge.s32.totalorder %s1623_s16, 2 }
 0x8cb   : > { %p1283_p13 = pnand %p2029_p10, %p1805_p6 }
 0x8cd   : > { %p1284_p11 = pneg %p1283_p13 }
 0x8cf   : > { %s1027_s23 = sand.u32 1, %s2027_s14  }
 0x8d0   : > { %s1028_s19 = scalar_lea.sflag [#allocation6], %s1027_s23 }
 0x8d1   : > { %1606 = dma.done.wait (%p1284_p11), %s1028_s19, 128  }
 0x8d2   : > { %1608 = vsyncadd (%p1284_p11), %s1028_s19, 4294967168  ;;  %s2030_s16 = sld [smem:[#allocation24_spill]]  ;;  %s2033_s29 = smov %s1615_s30 }
 0x8d3   : > { %s2031_s2 = sld [smem:[#allocation23_spill]] }
 0x8d4   : > { %s2032_s15 = sld [smem:[#allocation25_spill]] }
 0x8d8   : > { %p32_p0 = scmp.ge.s32.totalorder %s2030_s16, 4  }
 0x8d9   : > { %s2034_s30 = smov %s2031_s2 }
 0x8da   :  { %34 = sbr.rel (!%p32_p0) target bundleno = 17 (0x11), region = 151 }
 0x8df   :  { %1034 = vsyncpa [#allocation5], 1 }
 0x8e0   :  { %1036 = vsyncpa [#allocation5 + $0x1], 1 }
 0x8e1   :  { %1037 = vsyncpa [#allocation8], 1 }
 0x8e2   :  { %1039 = vsyncpa [#allocation8 + $0x1], 1 }
 0x8e3   :  { %1040 = vsyncpa [#allocation11], 1 }
 0x8e4   :  { %1041 = vsyncpa [#allocation14], 1 }
 0x8e5   :  { %1042 = vsyncpa [#allocation6], 1 }
 0x8e6   :  { %1044 = vsyncpa [#allocation6 + $0x1], 1 }

</bundles_post_ra>
